<compile_context>
chip_gen: v7x
topology: tpu7x:2x2x1
jax: 0.10.0
libtpu: 0.0.40
codegen_flags: <defaults>
</compile_context>

<pallas_src>
import functools

import jax
import jax.numpy as jnp
from jax.experimental import pallas as pl
from jax.experimental.pallas import tpu as pltpu

SIGMAS = (0.001, 0.01, 0.05, 0.1, 0.2, 1.0, 2.0)

_MMD_TILE_BUDGET = 24 * 1024 * 1024   # bytes for all double-buffered (N, tk) input tiles
_MMD_VMEM_CAP = 48 * 1024 * 1024      # stay under v7x's 64 MiB physical VMEM
_MSE_BLOCK_BYTES = 4 * 1024 * 1024    # target bytes per MSE input block


def _round_up(x, m):
    return (x + m - 1) // m * m


def _flatten(t):
    # matches torch .view(N, -1): contiguous reshape, native dtype, no HBM copy
    return t.reshape(t.shape[0], -1)


# --------------------------------------------------------------------------
# Fused multi-teacher MMD kernel (block-wise Gram accumulation over D tiles)
# --------------------------------------------------------------------------
def _mmd_kernel(*refs, n, t, d, tk, alphas, normalized, mask_cols):
    x_ref = refs[0]
    y_refs = refs[1:1 + t]
    out_ref = refs[1 + t]
    sc = refs[2 + t:]
    xx_ref = sc[0]                       # (n, n) f32
    yy_refs = sc[1:1 + t]                # t x (n, n) f32
    xy_refs = sc[1 + t:1 + 2 * t]        # t x (n, n) f32
    q_refs = sc[1 + 2 * t:2 + 3 * t]     # (1+t) x (n, 1) f32 squared row norms

    k = pl.program_id(0)

    @pl.when(k == 0)
    def _init():
        out_ref[...] = jnp.zeros_like(out_ref)
        for r in sc:
            r[...] = jnp.zeros_like(r)

    def load_tile(ref):
        z = ref[...]                                       # native dtype (bf16 stays bf16)
        if mask_cols:                                      # static: only when D % tk != 0
            lane = jax.lax.broadcasted_iota(jnp.int32, (1, tk), 1)
            z = jnp.where(k * tk + lane < d, z, jnp.zeros_like(z))
        return z

    def gram(a, b):                                        # a @ b.T, f32 accumulation (MXU)
        return jax.lax.dot_general(a, b, (((1,), (1,)), ((), ())),
                                   preferred_element_type=jnp.float32)

    x = load_tile(x_ref)
    xf = x.astype(jnp.float32)
    xx_ref[...] += gram(x, x)                              # hs Gram computed exactly once
    q_refs[0][...] += jnp.sum(xf * xf, axis=1, keepdims=True)
    for ti in range(t):                                    # static unroll over teachers
        y = load_tile(y_refs[ti])
        yf = y.astype(jnp.float32)
        yy_refs[ti][...] += gram(y, y)
        xy_refs[ti][...] += gram(x, y)
        q_refs[1 + ti][...] += jnp.sum(yf * yf, axis=1, keepdims=True)

    @pl.when(k == pl.num_programs(0) - 1)
    def _epilogue():
        ones_col = jnp.ones((n, 1), jnp.float32)

        def row_bcast(v):
            # (n,1) column -> (n,n) matrix B[i,j] = v[j] via a rank-1 MXU matmul;
            # avoids any sublane->lane relayout / transpose in the serial tail.
            return jax.lax.dot_general(ones_col, v, (((1,), (1,)), ((), ())),
                                       preferred_element_type=jnp.float32)

        def prep(q):
            # F.normalize(p=2, dim=1, eps=1e-12): scale = 1/max(||row||, 1e-12)
            if normalized:
                s = jax.lax.rsqrt(jnp.maximum(q, 1e-24))
                return q * s * s, s
            return q, None

        def rbf_block_sum(g, q_r, q_c, s_r, s_c):
            # sum over sigmas of sum_ij exp(-alpha * ||a_i - b_j||^2) for one N x N block
            if normalized:
                g = g * s_r * row_bcast(s_c)               # G'_ij = G_ij/(||a_i|| ||b_j||)
            d2 = jnp.maximum(q_r + row_bcast(q_c) - 2.0 * g, 1e-12)
            tot = jnp.float32(0.0)
            for a in alphas:                               # static unroll over sigmas
                tot = tot + jnp.sum(jnp.exp(-a * d2))
            return tot

        coef = jnp.float32(1.0 / (n * n))
        qx, sx = prep(q_refs[0][...])
        s_xx = rbf_block_sum(xx_ref[...], qx, qx, sx, sx)  # shared across all teachers
        total = jnp.float32(0.0)
        for ti in range(t):
            qy, sy = prep(q_refs[1 + ti][...])
            s_yy = rbf_block_sum(yy_refs[ti][...], qy, qy, sy, sy)
            s_xy = rbf_block_sum(xy_refs[ti][...], qx, qy, sx, sy)
            mmd = coef * (s_xx + s_yy) - 2.0 * coef * s_xy
            total = total + jnp.maximum(mmd, 0.0)          # F.relu per teacher
        out_ref[...] = jnp.reshape(total, (1, 1))


def mmd_multi_pallas(hs, ht_list, sigmas=SIGMAS, normalized=True):
    """sum_i MMD(hs, ht_i) in a single fused, D-tiled pallas_call."""
    if len(ht_list) == 0:
        return jnp.float32(0.0)

    x = _flatten(hs)
    ys = [_flatten(h) for h in ht_list]
    n, d = x.shape
    for y in ys:
        if y.shape != (n, d):
            raise ValueError("hs and all ht_i must flatten to the same (N, D) shape")
    t = len(ys)
    alphas = tuple(float(1.0 / (2.0 * s * s)) for s in sigmas)
    itemsize = max(jnp.dtype(x.dtype).itemsize,
                   max(jnp.dtype(y.dtype).itemsize for y in ys))

    # ---- VMEM budgeting (generation-safe; scratch footprint is linear in T) ----
    n_sub, n_lane = _round_up(n, 8), _round_up(n, 128)
    acc_bytes = (1 + 2 * t) * n_sub * n_lane * 4 + (1 + t) * n_sub * 128 * 4
    epi_bytes = 6 * n_sub * n_lane * 4                     # epilogue N x N temporaries
    tile_budget = min(_MMD_TILE_BUDGET, max(4 << 20, (44 << 20) - acc_bytes - epi_bytes))
    per_col128 = 2 * (1 + t) * n_sub * 128 * itemsize      # double-buffered bytes / 128 lanes
    tk_max = max(128, (tile_budget // per_col128) * 128)

    if _round_up(d, 128) <= tk_max:
        tk, nk, mask_cols = d, 1, False                    # whole D in one tile, no padding
    else:
        tk = max(128, (tk_max // 256) * 256)               # bf16 / MXU friendly multiple
        nk = pl.cdiv(d, tk)
        mask_cols = (d % tk) != 0                          # ragged last tile masked in-kernel

    in_bytes = 2 * (1 + t) * n_sub * tk * itemsize
    needed = in_bytes + acc_bytes + epi_bytes + (1 << 16)
    vmem_limit = int(max(min(max(2 * needed, 32 << 20), _MMD_VMEM_CAP), needed + (2 << 20)))

    kernel = functools.partial(
        _mmd_kernel, n=int(n), t=int(t), d=int(d), tk=int(tk),
        alphas=alphas, normalized=bool(normalized), mask_cols=bool(mask_cols))

    out = pl.pallas_call(
        kernel,
        out_shape=jax.ShapeDtypeStruct((1, 1), jnp.float32),
        grid=(nk,),
        in_specs=[pl.BlockSpec((n, tk), lambda k: (0, k))] * (1 + t),
        out_specs=pl.BlockSpec((1, 1), lambda k: (0, 0)),
        scratch_shapes=(
            [pltpu.VMEM((n, n), jnp.float32)]                          # xx
            + [pltpu.VMEM((n, n), jnp.float32) for _ in range(t)]      # yy_t
            + [pltpu.VMEM((n, n), jnp.float32) for _ in range(t)]      # xy_t
            + [pltpu.VMEM((n, 1), jnp.float32) for _ in range(1 + t)]  # row norms (x, y_t)
        ),
        compiler_params=pltpu.CompilerParams(
            dimension_semantics=("arbitrary",),
            vmem_limit_bytes=vmem_limit),
    )(x, *ys)
    return out[0, 0]


# --------------------------------------------------------------------------
# Tiled MSE (mean squared error) kernel: one launch per pair, no copies
# --------------------------------------------------------------------------
def _mse_sum_kernel(a_ref, b_ref, o_ref, *, rows, blk_rows, mask_rows):
    i = pl.program_id(0)

    @pl.when(i == 0)
    def _init():
        o_ref[...] = jnp.zeros_like(o_ref)

    diff = a_ref[...].astype(jnp.float32) - b_ref[...].astype(jnp.float32)
    if mask_rows:                                          # static: only when rows % blk != 0
        r = jax.lax.broadcasted_iota(jnp.int32, (blk_rows, 1), 0)
        diff = jnp.where(i * blk_rows + r < rows, diff, 0.0)
    o_ref[...] += jnp.reshape(jnp.sum(diff * diff), (1, 1))


def mse_mean_pallas(a, b):
    """F.mse_loss(a, b) (mean) via a tiled, grid-reduced Pallas sum of squared differences."""
    if a.shape != b.shape:
        raise ValueError("mse pairs must have identical shapes")
    p = int(a.size)
    a1, b1 = a.reshape(-1), b.reshape(-1)
    lanes = next((c for c in (512, 256, 128) if p % c == 0), None)
    if lanes is None:
        # Ragged numel (rare for conv feature maps): zero-pad the flat view; zeros add 0.
        pad = _round_up(p, 128) - p
        a1, b1 = jnp.pad(a1, (0, pad)), jnp.pad(b1, (0, pad))
        lanes = 128
    rows = a1.size // lanes
    a2, b2 = a1.reshape(rows, lanes), b1.reshape(rows, lanes)   # contiguous: no HBM copy
    itemsize = max(jnp.dtype(a.dtype).itemsize, jnp.dtype(b.dtype).itemsize)

    target_rows = max(8, (_MSE_BLOCK_BYTES // (lanes * itemsize)) // 8 * 8)
    if rows <= target_rows:
        blk_rows, nblk, mask_rows = rows, 1, False
    else:
        blk_rows = target_rows
        nblk = pl.cdiv(rows, blk_rows)
        mask_rows = (rows % blk_rows) != 0                 # ragged last tile masked in-kernel

    needed = 2 * 2 * blk_rows * lanes * itemsize + (1 << 14)
    vmem_limit = int(max(min(max(2 * needed, 32 << 20), _MMD_VMEM_CAP), needed + (1 << 20)))

    out = pl.pallas_call(
        functools.partial(_mse_sum_kernel, rows=int(rows), blk_rows=int(blk_rows),
                          mask_rows=bool(mask_rows)),
        out_shape=jax.ShapeDtypeStruct((1, 1), jnp.float32),
        grid=(nblk,),
        in_specs=[pl.BlockSpec((blk_rows, lanes), lambda i: (i, 0))] * 2,
        out_specs=pl.BlockSpec((1, 1), lambda i: (0, 0)),
        compiler_params=pltpu.CompilerParams(
            dimension_semantics=("arbitrary",),
            vmem_limit_bytes=vmem_limit),
    )(a2, b2)
    return out[0, 0] / float(p)


# --------------------------------------------------------------------------
# CFLoss forward
# --------------------------------------------------------------------------
def cf_loss(hs, ht, ft_, ft, sigmas=SIGMAS, normalized=True, beta=1.0):
    """Forward pass of CFLoss: sum_i MMD(hs, ht_i) + beta * sum_j mse_loss(ft_[j], ft[j])."""
    mmd_loss = mmd_multi_pallas(hs, list(ht), sigmas, normalized)
    mse_loss = jnp.float32(0.0)
    for a, b in zip(ft_, ft):
        mse_loss = mse_loss + mse_mean_pallas(a, b)        # one launch per pair (no concat)
    return mmd_loss + beta * mse_loss


if __name__ == "__main__":
    key = jax.random.PRNGKey(0)
    ks = jax.random.split(key, 7)
    N, C, H, W = 8, 4, 16, 16  # D = C*H*W = 1024

    hs = jax.random.normal(ks[0], (N, C, H, W), jnp.float32)
    ht = [
        jax.random.normal(ks[1], (N, C, H, W), jnp.float32),
        jax.random.normal(ks[2], (N, C, H, W), jnp.float32),
    ]
    ft_ = [
        jax.random.normal(ks[3], (N, C, H, W), jnp.float32),
        jax.random.normal(ks[4], (N, C, H, W), jnp.float32),
    ]
    ft = [
        jax.random.normal(ks[5], (N, C, H, W), jnp.float32),
        jax.random.normal(ks[6], (N, C, H, W), jnp.float32),
    ]

    loss = cf_loss(hs, ht, ft_, ft, sigmas=SIGMAS, normalized=True, beta=1.0)
    jax.block_until_ready(loss)
    print("KERNEL_OK")
</pallas_src>

<mosaic_0001>
module attributes {stable_mosaic.version = 11 : i64} {
  func.func @_mmd_kernel(%arg0: i32, %arg1: memref<8x1024xf32, #tpu.memory_space<vmem>>, %arg2: memref<8x1024xf32, #tpu.memory_space<vmem>>, %arg3: memref<8x1024xf32, #tpu.memory_space<vmem>>, %arg4: memref<1x1xf32, #tpu.memory_space<vmem>>, %arg5: memref<8x8xf32, #tpu.memory_space<vmem>>, %arg6: memref<8x8xf32, #tpu.memory_space<vmem>>, %arg7: memref<8x8xf32, #tpu.memory_space<vmem>>, %arg8: memref<8x8xf32, #tpu.memory_space<vmem>>, %arg9: memref<8x8xf32, #tpu.memory_space<vmem>>, %arg10: memref<8x1xf32, #tpu.memory_space<vmem>>, %arg11: memref<8x1xf32, #tpu.memory_space<vmem>>, %arg12: memref<8x1xf32, #tpu.memory_space<vmem>>) attributes {dimension_semantics = [#tpu.dimension_semantics<arbitrary>], iteration_bounds = array<i64: 1>, scalar_prefetch = 0 : i64, scratch_operands = 8 : i64, tpu.core_type = #tpu.core_type<tc>, window_params = [{transform_indices = @transform_0, window_bounds = array<i64: 8, 1024>}, {transform_indices = @transform_1, window_bounds = array<i64: 8, 1024>}, {transform_indices = @transform_2, window_bounds = array<i64: 8, 1024>}, {pipeline_mode = #tpu.pipeline_mode<synchronous>, transform_indices = @transform_3, window_bounds = array<i64: 1, 1>}]} {
    %c0_i32 = arith.constant 0 : i32
    %0 = arith.cmpi eq, %arg0, %c0_i32 : i32
    %1 = arith.extui %0 : i1 to i32
    %c0_i32_0 = arith.constant 0 : i32
    %2 = arith.cmpi ne, %1, %c0_i32_0 : i32
    scf.if %2 {
      %cst_47 = arith.constant 0.000000e+00 : f32
      %47 = vector.broadcast %cst_47 : f32 to vector<1x1xf32>
      %c0_48 = arith.constant 0 : index
      %c0_49 = arith.constant 0 : index
      %48 = vector.load %arg4[%c0_48, %c0_49] : memref<1x1xf32, #tpu.memory_space<vmem>>, vector<1x1xf32>
      tpu.vector_store %arg4[%c0_48, %c0_49], %47 {strides = array<i32>} : memref<1x1xf32, #tpu.memory_space<vmem>>, vector<1x1xf32>,
      %cst_50 = arith.constant 0.000000e+00 : f32
      %49 = vector.broadcast %cst_50 : f32 to vector<8x8xf32>
      %c0_51 = arith.constant 0 : index
      %c0_52 = arith.constant 0 : index
      %50 = vector.load %arg5[%c0_51, %c0_52] : memref<8x8xf32, #tpu.memory_space<vmem>>, vector<8x8xf32>
      tpu.vector_store %arg5[%c0_51, %c0_52], %49 {strides = array<i32>} : memref<8x8xf32, #tpu.memory_space<vmem>>, vector<8x8xf32>,
      %cst_53 = arith.constant 0.000000e+00 : f32
      %51 = vector.broadcast %cst_53 : f32 to vector<8x8xf32>
      %c0_54 = arith.constant 0 : index
      %c0_55 = arith.constant 0 : index
      %52 = vector.load %arg6[%c0_54, %c0_55] : memref<8x8xf32, #tpu.memory_space<vmem>>, vector<8x8xf32>
      tpu.vector_store %arg6[%c0_54, %c0_55], %51 {strides = array<i32>} : memref<8x8xf32, #tpu.memory_space<vmem>>, vector<8x8xf32>,
      %cst_56 = arith.constant 0.000000e+00 : f32
      %53 = vector.broadcast %cst_56 : f32 to vector<8x8xf32>
      %c0_57 = arith.constant 0 : index
      %c0_58 = arith.constant 0 : index
      %54 = vector.load %arg7[%c0_57, %c0_58] : memref<8x8xf32, #tpu.memory_space<vmem>>, vector<8x8xf32>
      tpu.vector_store %arg7[%c0_57, %c0_58], %53 {strides = array<i32>} : memref<8x8xf32, #tpu.memory_space<vmem>>, vector<8x8xf32>,
      %cst_59 = arith.constant 0.000000e+00 : f32
      %55 = vector.broadcast %cst_59 : f32 to vector<8x8xf32>
      %c0_60 = arith.constant 0 : index
      %c0_61 = arith.constant 0 : index
      %56 = vector.load %arg8[%c0_60, %c0_61] : memref<8x8xf32, #tpu.memory_space<vmem>>, vector<8x8xf32>
      tpu.vector_store %arg8[%c0_60, %c0_61], %55 {strides = array<i32>} : memref<8x8xf32, #tpu.memory_space<vmem>>, vector<8x8xf32>,
      %cst_62 = arith.constant 0.000000e+00 : f32
      %57 = vector.broadcast %cst_62 : f32 to vector<8x8xf32>
      %c0_63 = arith.constant 0 : index
      %c0_64 = arith.constant 0 : index
      %58 = vector.load %arg9[%c0_63, %c0_64] : memref<8x8xf32, #tpu.memory_space<vmem>>, vector<8x8xf32>
      tpu.vector_store %arg9[%c0_63, %c0_64], %57 {strides = array<i32>} : memref<8x8xf32, #tpu.memory_space<vmem>>, vector<8x8xf32>,
      %cst_65 = arith.constant 0.000000e+00 : f32
      %59 = vector.broadcast %cst_65 : f32 to vector<8x1xf32>
      %c0_66 = arith.constant 0 : index
      %c0_67 = arith.constant 0 : index
      %60 = vector.load %arg10[%c0_66, %c0_67] : memref<8x1xf32, #tpu.memory_space<vmem>>, vector<8x1xf32>
      tpu.vector_store %arg10[%c0_66, %c0_67], %59 {strides = array<i32>} : memref<8x1xf32, #tpu.memory_space<vmem>>, vector<8x1xf32>,
      %cst_68 = arith.constant 0.000000e+00 : f32
      %61 = vector.broadcast %cst_68 : f32 to vector<8x1xf32>
      %c0_69 = arith.constant 0 : index
      %c0_70 = arith.constant 0 : index
      %62 = vector.load %arg11[%c0_69, %c0_70] : memref<8x1xf32, #tpu.memory_space<vmem>>, vector<8x1xf32>
      tpu.vector_store %arg11[%c0_69, %c0_70], %61 {strides = array<i32>} : memref<8x1xf32, #tpu.memory_space<vmem>>, vector<8x1xf32>,
      %cst_71 = arith.constant 0.000000e+00 : f32
      %63 = vector.broadcast %cst_71 : f32 to vector<8x1xf32>
      %c0_72 = arith.constant 0 : index
      %c0_73 = arith.constant 0 : index
      %64 = vector.load %arg12[%c0_72, %c0_73] : memref<8x1xf32, #tpu.memory_space<vmem>>, vector<8x1xf32>
      tpu.vector_store %arg12[%c0_72, %c0_73], %63 {strides = array<i32>} : memref<8x1xf32, #tpu.memory_space<vmem>>, vector<8x1xf32>,
    } else {
    }
    %c0 = arith.constant 0 : index
    %c0_1 = arith.constant 0 : index
    %3 = vector.load %arg1[%c0, %c0_1] : memref<8x1024xf32, #tpu.memory_space<vmem>>, vector<8x1024xf32>
    %c0_2 = arith.constant 0 : index
    %c0_3 = arith.constant 0 : index
    %4 = vector.load %arg5[%c0_2, %c0_3] : memref<8x8xf32, #tpu.memory_space<vmem>>, vector<8x8xf32>
    %cst = arith.constant dense<0.000000e+00> : vector<8x8xf32>
    %5 = tpu.matmul %3, %3, %cst {dimension_numbers = #tpu.dot_dimension_numbers<[1], [1], [0], [0], [0, 0, 1, 0], [], []>} : vector<8x1024xf32>, vector<8x1024xf32>, vector<8x8xf32> -> vector<8x8xf32>
    %6 = arith.addf %4, %5 : vector<8x8xf32>
    %c0_4 = arith.constant 0 : index
    %c0_5 = arith.constant 0 : index
    %7 = vector.load %arg5[%c0_4, %c0_5] : memref<8x8xf32, #tpu.memory_space<vmem>>, vector<8x8xf32>
    tpu.vector_store %arg5[%c0_4, %c0_5], %6 {strides = array<i32>} : memref<8x8xf32, #tpu.memory_space<vmem>>, vector<8x8xf32>,
    %c0_6 = arith.constant 0 : index
    %c0_7 = arith.constant 0 : index
    %8 = vector.load %arg10[%c0_6, %c0_7] : memref<8x1xf32, #tpu.memory_space<vmem>>, vector<8x1xf32>
    %9 = arith.mulf %3, %3 : vector<8x1024xf32>
    %cst_8 = arith.constant dense<0.000000e+00> : vector<8xf32>
    %10 = vector.multi_reduction <add>, %9, %cst_8 [1] : vector<8x1024xf32> to vector<8xf32>
    %11 = vector.shape_cast %10 : vector<8xf32> to vector<8x1xf32>
    %12 = arith.addf %8, %11 : vector<8x1xf32>
    %c0_9 = arith.constant 0 : index
    %c0_10 = arith.constant 0 : index
    %13 = vector.load %arg10[%c0_9, %c0_10] : memref<8x1xf32, #tpu.memory_space<vmem>>, vector<8x1xf32>
    tpu.vector_store %arg10[%c0_9, %c0_10], %12 {strides = array<i32>} : memref<8x1xf32, #tpu.memory_space<vmem>>, vector<8x1xf32>,
    %c0_11 = arith.constant 0 : index
    %c0_12 = arith.constant 0 : index
    %14 = vector.load %arg2[%c0_11, %c0_12] : memref<8x1024xf32, #tpu.memory_space<vmem>>, vector<8x1024xf32>
    %c0_13 = arith.constant 0 : index
    %c0_14 = arith.constant 0 : index
    %15 = vector.load %arg6[%c0_13, %c0_14] : memref<8x8xf32, #tpu.memory_space<vmem>>, vector<8x8xf32>
    %cst_15 = arith.constant dense<0.000000e+00> : vector<8x8xf32>
    %16 = tpu.matmul %14, %14, %cst_15 {dimension_numbers = #tpu.dot_dimension_numbers<[1], [1], [0], [0], [0, 0, 1, 0], [], []>} : vector<8x1024xf32>, vector<8x1024xf32>, vector<8x8xf32> -> vector<8x8xf32>
    %17 = arith.addf %15, %16 : vector<8x8xf32>
    %c0_16 = arith.constant 0 : index
    %c0_17 = arith.constant 0 : index
    %18 = vector.load %arg6[%c0_16, %c0_17] : memref<8x8xf32, #tpu.memory_space<vmem>>, vector<8x8xf32>
    tpu.vector_store %arg6[%c0_16, %c0_17], %17 {strides = array<i32>} : memref<8x8xf32, #tpu.memory_space<vmem>>, vector<8x8xf32>,
    %c0_18 = arith.constant 0 : index
    %c0_19 = arith.constant 0 : index
    %19 = vector.load %arg8[%c0_18, %c0_19] : memref<8x8xf32, #tpu.memory_space<vmem>>, vector<8x8xf32>
    %cst_20 = arith.constant dense<0.000000e+00> : vector<8x8xf32>
    %20 = tpu.matmul %3, %14, %cst_20 {dimension_numbers = #tpu.dot_dimension_numbers<[1], [1], [0], [0], [0, 0, 1, 0], [], []>} : vector<8x1024xf32>, vector<8x1024xf32>, vector<8x8xf32> -> vector<8x8xf32>
    %21 = arith.addf %19, %20 : vector<8x8xf32>
    %c0_21 = arith.constant 0 : index
    %c0_22 = arith.constant 0 : index
    %22 = vector.load %arg8[%c0_21, %c0_22] : memref<8x8xf32, #tpu.memory_space<vmem>>, vector<8x8xf32>
    tpu.vector_store %arg8[%c0_21, %c0_22], %21 {strides = array<i32>} : memref<8x8xf32, #tpu.memory_space<vmem>>, vector<8x8xf32>,
    %c0_23 = arith.constant 0 : index
    %c0_24 = arith.constant 0 : index
    %23 = vector.load %arg11[%c0_23, %c0_24] : memref<8x1xf32, #tpu.memory_space<vmem>>, vector<8x1xf32>
    %24 = arith.mulf %14, %14 : vector<8x1024xf32>
    %cst_25 = arith.constant dense<0.000000e+00> : vector<8xf32>
    %25 = vector.multi_reduction <add>, %24, %cst_25 [1] : vector<8x1024xf32> to vector<8xf32>
    %26 = vector.shape_cast %25 : vector<8xf32> to vector<8x1xf32>
    %27 = arith.addf %23, %26 : vector<8x1xf32>
    %c0_26 = arith.constant 0 : index
    %c0_27 = arith.constant 0 : index
    %28 = vector.load %arg11[%c0_26, %c0_27] : memref<8x1xf32, #tpu.memory_space<vmem>>, vector<8x1xf32>
    tpu.vector_store %arg11[%c0_26, %c0_27], %27 {strides = array<i32>} : memref<8x1xf32, #tpu.memory_space<vmem>>, vector<8x1xf32>,
    %c0_28 = arith.constant 0 : index
    %c0_29 = arith.constant 0 : index
    %29 = vector.load %arg3[%c0_28, %c0_29] : memref<8x1024xf32, #tpu.memory_space<vmem>>, vector<8x1024xf32>
    %c0_30 = arith.constant 0 : index
    %c0_31 = arith.constant 0 : index
    %30 = vector.load %arg7[%c0_30, %c0_31] : memref<8x8xf32, #tpu.memory_space<vmem>>, vector<8x8xf32>
    %cst_32 = arith.constant dense<0.000000e+00> : vector<8x8xf32>
    %31 = tpu.matmul %29, %29, %cst_32 {dimension_numbers = #tpu.dot_dimension_numbers<[1], [1], [0], [0], [0, 0, 1, 0], [], []>} : vector<8x1024xf32>, vector<8x1024xf32>, vector<8x8xf32> -> vector<8x8xf32>
    %32 = arith.addf %30, %31 : vector<8x8xf32>
    %c0_33 = arith.constant 0 : index
    %c0_34 = arith.constant 0 : index
    %33 = vector.load %arg7[%c0_33, %c0_34] : memref<8x8xf32, #tpu.memory_space<vmem>>, vector<8x8xf32>
    tpu.vector_store %arg7[%c0_33, %c0_34], %32 {strides = array<i32>} : memref<8x8xf32, #tpu.memory_space<vmem>>, vector<8x8xf32>,
    %c0_35 = arith.constant 0 : index
    %c0_36 = arith.constant 0 : index
    %34 = vector.load %arg9[%c0_35, %c0_36] : memref<8x8xf32, #tpu.memory_space<vmem>>, vector<8x8xf32>
    %cst_37 = arith.constant dense<0.000000e+00> : vector<8x8xf32>
    %35 = tpu.matmul %3, %29, %cst_37 {dimension_numbers = #tpu.dot_dimension_numbers<[1], [1], [0], [0], [0, 0, 1, 0], [], []>} : vector<8x1024xf32>, vector<8x1024xf32>, vector<8x8xf32> -> vector<8x8xf32>
    %36 = arith.addf %34, %35 : vector<8x8xf32>
    %c0_38 = arith.constant 0 : index
    %c0_39 = arith.constant 0 : index
    %37 = vector.load %arg9[%c0_38, %c0_39] : memref<8x8xf32, #tpu.memory_space<vmem>>, vector<8x8xf32>
    tpu.vector_store %arg9[%c0_38, %c0_39], %36 {strides = array<i32>} : memref<8x8xf32, #tpu.memory_space<vmem>>, vector<8x8xf32>,
    %c0_40 = arith.constant 0 : index
    %c0_41 = arith.constant 0 : index
    %38 = vector.load %arg12[%c0_40, %c0_41] : memref<8x1xf32, #tpu.memory_space<vmem>>, vector<8x1xf32>
    %39 = arith.mulf %29, %29 : vector<8x1024xf32>
    %cst_42 = arith.constant dense<0.000000e+00> : vector<8xf32>
    %40 = vector.multi_reduction <add>, %39, %cst_42 [1] : vector<8x1024xf32> to vector<8xf32>
    %41 = vector.shape_cast %40 : vector<8xf32> to vector<8x1xf32>
    %42 = arith.addf %38, %41 : vector<8x1xf32>
    %c0_43 = arith.constant 0 : index
    %c0_44 = arith.constant 0 : index
    %43 = vector.load %arg12[%c0_43, %c0_44] : memref<8x1xf32, #tpu.memory_space<vmem>>, vector<8x1xf32>
    tpu.vector_store %arg12[%c0_43, %c0_44], %42 {strides = array<i32>} : memref<8x1xf32, #tpu.memory_space<vmem>>, vector<8x1xf32>,
    %c0_i32_45 = arith.constant 0 : i32
    %44 = arith.cmpi eq, %arg0, %c0_i32_45 : i32
    %45 = arith.extui %44 : i1 to i32
    %c0_i32_46 = arith.constant 0 : i32
    %46 = arith.cmpi ne, %45, %c0_i32_46 : i32
    scf.if %46 {
      %cst_47 = arith.constant 1.000000e+00 : f32
      %47 = vector.broadcast %cst_47 : f32 to vector<8x1xf32>
      %c0_48 = arith.constant 0 : index
      %c0_49 = arith.constant 0 : index
      %48 = vector.load %arg10[%c0_48, %c0_49] : memref<8x1xf32, #tpu.memory_space<vmem>>, vector<8x1xf32>
      %cst_50 = arith.constant 1.000000e-24 : f32
      %49 = vector.broadcast %cst_50 : f32 to vector<8x1xf32>
      %50 = arith.maximumf %48, %49 : vector<8x1xf32>
      %51 = math.rsqrt %50 : vector<8x1xf32>
      %52 = arith.mulf %48, %51 : vector<8x1xf32>
      %53 = arith.mulf %52, %51 : vector<8x1xf32>
      %c0_51 = arith.constant 0 : index
      %c0_52 = arith.constant 0 : index
      %54 = vector.load %arg5[%c0_51, %c0_52] : memref<8x8xf32, #tpu.memory_space<vmem>>, vector<8x8xf32>
      %55 = vector.broadcast %51 : vector<8x1xf32> to vector<8x8xf32>
      %56 = arith.mulf %54, %55 : vector<8x8xf32>
      %cst_53 = arith.constant dense<0.000000e+00> : vector<8x8xf32>
      %57 = tpu.matmul %47, %51, %cst_53 {dimension_numbers = #tpu.dot_dimension_numbers<[1], [1], [0], [0], [0, 0, 1, 0], [], []>} : vector<8x1xf32>, vector<8x1xf32>, vector<8x8xf32> -> vector<8x8xf32>
      %58 = arith.mulf %56, %57 : vector<8x8xf32>
      %cst_54 = arith.constant dense<0.000000e+00> : vector<8x8xf32>
      %59 = tpu.matmul %47, %53, %cst_54 {dimension_numbers = #tpu.dot_dimension_numbers<[1], [1], [0], [0], [0, 0, 1, 0], [], []>} : vector<8x1xf32>, vector<8x1xf32>, vector<8x8xf32> -> vector<8x8xf32>
      %60 = vector.broadcast %53 : vector<8x1xf32> to vector<8x8xf32>
      %61 = arith.addf %60, %59 : vector<8x8xf32>
      %cst_55 = arith.constant 2.000000e+00 : f32
      %62 = vector.broadcast %cst_55 : f32 to vector<8x8xf32>
      %63 = arith.mulf %62, %58 : vector<8x8xf32>
      %64 = arith.subf %61, %63 : vector<8x8xf32>
      %cst_56 = arith.constant 9.99999996E-13 : f32
      %65 = vector.broadcast %cst_56 : f32 to vector<8x8xf32>
      %66 = arith.maximumf %64, %65 : vector<8x8xf32>
      %cst_57 = arith.constant -5.000000e+05 : f32
      %67 = vector.broadcast %cst_57 : f32 to vector<8x8xf32>
      %68 = arith.mulf %67, %66 : vector<8x8xf32>
      %69 = math.exp %68 : vector<8x8xf32>
      %70 = vector.shape_cast %69 : vector<8x8xf32> to vector<1x8x8xf32>
      %cst_58 = arith.constant dense<0.000000e+00> : vector<1xf32>
      %71 = vector.multi_reduction <add>, %70, %cst_58 [1, 2] : vector<1x8x8xf32> to vector<1xf32>
      %72 = vector.shape_cast %71 : vector<1xf32> to vector<1x1x1xf32>
      %73 = vector.extract %72[0, 0, 0] : f32 from vector<1x1x1xf32>
      %cst_59 = arith.constant 0.000000e+00 : f32
      %74 = arith.addf %cst_59, %73 : f32
      %cst_60 = arith.constant -5.000000e+03 : f32
      %75 = vector.broadcast %cst_60 : f32 to vector<8x8xf32>
      %76 = arith.mulf %75, %66 : vector<8x8xf32>
      %77 = math.exp %76 : vector<8x8xf32>
      %78 = vector.shape_cast %77 : vector<8x8xf32> to vector<1x8x8xf32>
      %cst_61 = arith.constant dense<0.000000e+00> : vector<1xf32>
      %79 = vector.multi_reduction <add>, %78, %cst_61 [1, 2] : vector<1x8x8xf32> to vector<1xf32>
      %80 = vector.shape_cast %79 : vector<1xf32> to vector<1x1x1xf32>
      %81 = vector.extract %80[0, 0, 0] : f32 from vector<1x1x1xf32>
      %82 = arith.addf %74, %81 : f32
      %cst_62 = arith.constant -2.000000e+02 : f32
      %83 = vector.broadcast %cst_62 : f32 to vector<8x8xf32>
      %84 = arith.mulf %83, %66 : vector<8x8xf32>
      %85 = math.exp %84 : vector<8x8xf32>
      %86 = vector.shape_cast %85 : vector<8x8xf32> to vector<1x8x8xf32>
      %cst_63 = arith.constant dense<0.000000e+00> : vector<1xf32>
      %87 = vector.multi_reduction <add>, %86, %cst_63 [1, 2] : vector<1x8x8xf32> to vector<1xf32>
      %88 = vector.shape_cast %87 : vector<1xf32> to vector<1x1x1xf32>
      %89 = vector.extract %88[0, 0, 0] : f32 from vector<1x1x1xf32>
      %90 = arith.addf %82, %89 : f32
      %cst_64 = arith.constant -5.000000e+01 : f32
      %91 = vector.broadcast %cst_64 : f32 to vector<8x8xf32>
      %92 = arith.mulf %91, %66 : vector<8x8xf32>
      %93 = math.exp %92 : vector<8x8xf32>
      %94 = vector.shape_cast %93 : vector<8x8xf32> to vector<1x8x8xf32>
      %cst_65 = arith.constant dense<0.000000e+00> : vector<1xf32>
      %95 = vector.multi_reduction <add>, %94, %cst_65 [1, 2] : vector<1x8x8xf32> to vector<1xf32>
      %96 = vector.shape_cast %95 : vector<1xf32> to vector<1x1x1xf32>
      %97 = vector.extract %96[0, 0, 0] : f32 from vector<1x1x1xf32>
      %98 = arith.addf %90, %97 : f32
      %cst_66 = arith.constant -1.250000e+01 : f32
      %99 = vector.broadcast %cst_66 : f32 to vector<8x8xf32>
      %100 = arith.mulf %99, %66 : vector<8x8xf32>
      %101 = math.exp %100 : vector<8x8xf32>
      %102 = vector.shape_cast %101 : vector<8x8xf32> to vector<1x8x8xf32>
      %cst_67 = arith.constant dense<0.000000e+00> : vector<1xf32>
      %103 = vector.multi_reduction <add>, %102, %cst_67 [1, 2] : vector<1x8x8xf32> to vector<1xf32>
      %104 = vector.shape_cast %103 : vector<1xf32> to vector<1x1x1xf32>
      %105 = vector.extract %104[0, 0, 0] : f32 from vector<1x1x1xf32>
      %106 = arith.addf %98, %105 : f32
      %cst_68 = arith.constant -5.000000e-01 : f32
      %107 = vector.broadcast %cst_68 : f32 to vector<8x8xf32>
      %108 = arith.mulf %107, %66 : vector<8x8xf32>
      %109 = math.exp %108 : vector<8x8xf32>
      %110 = vector.shape_cast %109 : vector<8x8xf32> to vector<1x8x8xf32>
      %cst_69 = arith.constant dense<0.000000e+00> : vector<1xf32>
      %111 = vector.multi_reduction <add>, %110, %cst_69 [1, 2] : vector<1x8x8xf32> to vector<1xf32>
      %112 = vector.shape_cast %111 : vector<1xf32> to vector<1x1x1xf32>
      %113 = vector.extract %112[0, 0, 0] : f32 from vector<1x1x1xf32>
      %114 = arith.addf %106, %113 : f32
      %cst_70 = arith.constant -1.250000e-01 : f32
      %115 = vector.broadcast %cst_70 : f32 to vector<8x8xf32>
      %116 = arith.mulf %115, %66 : vector<8x8xf32>
      %117 = math.exp %116 : vector<8x8xf32>
      %118 = vector.shape_cast %117 : vector<8x8xf32> to vector<1x8x8xf32>
      %cst_71 = arith.constant dense<0.000000e+00> : vector<1xf32>
      %119 = vector.multi_reduction <add>, %118, %cst_71 [1, 2] : vector<1x8x8xf32> to vector<1xf32>
      %120 = vector.shape_cast %119 : vector<1xf32> to vector<1x1x1xf32>
      %121 = vector.extract %120[0, 0, 0] : f32 from vector<1x1x1xf32>
      %122 = arith.addf %114, %121 : f32
      %c0_72 = arith.constant 0 : index
      %c0_73 = arith.constant 0 : index
      %123 = vector.load %arg11[%c0_72, %c0_73] : memref<8x1xf32, #tpu.memory_space<vmem>>, vector<8x1xf32>
      %cst_74 = arith.constant 1.000000e-24 : f32
      %124 = vector.broadcast %cst_74 : f32 to vector<8x1xf32>
      %125 = arith.maximumf %123, %124 : vector<8x1xf32>
      %126 = math.rsqrt %125 : vector<8x1xf32>
      %127 = arith.mulf %123, %126 : vector<8x1xf32>
      %128 = arith.mulf %127, %126 : vector<8x1xf32>
      %c0_75 = arith.constant 0 : index
      %c0_76 = arith.constant 0 : index
      %129 = vector.load %arg6[%c0_75, %c0_76] : memref<8x8xf32, #tpu.memory_space<vmem>>, vector<8x8xf32>
      %130 = vector.broadcast %126 : vector<8x1xf32> to vector<8x8xf32>
      %131 = arith.mulf %129, %130 : vector<8x8xf32>
      %cst_77 = arith.constant dense<0.000000e+00> : vector<8x8xf32>
      %132 = tpu.matmul %47, %126, %cst_77 {dimension_numbers = #tpu.dot_dimension_numbers<[1], [1], [0], [0], [0, 0, 1, 0], [], []>} : vector<8x1xf32>, vector<8x1xf32>, vector<8x8xf32> -> vector<8x8xf32>
      %133 = arith.mulf %131, %132 : vector<8x8xf32>
      %cst_78 = arith.constant dense<0.000000e+00> : vector<8x8xf32>
      %134 = tpu.matmul %47, %128, %cst_78 {dimension_numbers = #tpu.dot_dimension_numbers<[1], [1], [0], [0], [0, 0, 1, 0], [], []>} : vector<8x1xf32>, vector<8x1xf32>, vector<8x8xf32> -> vector<8x8xf32>
      %135 = vector.broadcast %128 : vector<8x1xf32> to vector<8x8xf32>
      %136 = arith.addf %135, %134 : vector<8x8xf32>
      %cst_79 = arith.constant 2.000000e+00 : f32
      %137 = vector.broadcast %cst_79 : f32 to vector<8x8xf32>
      %138 = arith.mulf %137, %133 : vector<8x8xf32>
      %139 = arith.subf %136, %138 : vector<8x8xf32>
      %cst_80 = arith.constant 9.99999996E-13 : f32
      %140 = vector.broadcast %cst_80 : f32 to vector<8x8xf32>
      %141 = arith.maximumf %139, %140 : vector<8x8xf32>
      %cst_81 = arith.constant -5.000000e+05 : f32
      %142 = vector.broadcast %cst_81 : f32 to vector<8x8xf32>
      %143 = arith.mulf %142, %141 : vector<8x8xf32>
      %144 = math.exp %143 : vector<8x8xf32>
      %145 = vector.shape_cast %144 : vector<8x8xf32> to vector<1x8x8xf32>
      %cst_82 = arith.constant dense<0.000000e+00> : vector<1xf32>
      %146 = vector.multi_reduction <add>, %145, %cst_82 [1, 2] : vector<1x8x8xf32> to vector<1xf32>
      %147 = vector.shape_cast %146 : vector<1xf32> to vector<1x1x1xf32>
      %148 = vector.extract %147[0, 0, 0] : f32 from vector<1x1x1xf32>
      %cst_83 = arith.constant 0.000000e+00 : f32
      %149 = arith.addf %cst_83, %148 : f32
      %cst_84 = arith.constant -5.000000e+03 : f32
      %150 = vector.broadcast %cst_84 : f32 to vector<8x8xf32>
      %151 = arith.mulf %150, %141 : vector<8x8xf32>
      %152 = math.exp %151 : vector<8x8xf32>
      %153 = vector.shape_cast %152 : vector<8x8xf32> to vector<1x8x8xf32>
      %cst_85 = arith.constant dense<0.000000e+00> : vector<1xf32>
      %154 = vector.multi_reduction <add>, %153, %cst_85 [1, 2] : vector<1x8x8xf32> to vector<1xf32>
      %155 = vector.shape_cast %154 : vector<1xf32> to vector<1x1x1xf32>
      %156 = vector.extract %155[0, 0, 0] : f32 from vector<1x1x1xf32>
      %157 = arith.addf %149, %156 : f32
      %cst_86 = arith.constant -2.000000e+02 : f32
      %158 = vector.broadcast %cst_86 : f32 to vector<8x8xf32>
      %159 = arith.mulf %158, %141 : vector<8x8xf32>
      %160 = math.exp %159 : vector<8x8xf32>
      %161 = vector.shape_cast %160 : vector<8x8xf32> to vector<1x8x8xf32>
      %cst_87 = arith.constant dense<0.000000e+00> : vector<1xf32>
      %162 = vector.multi_reduction <add>, %161, %cst_87 [1, 2] : vector<1x8x8xf32> to vector<1xf32>
      %163 = vector.shape_cast %162 : vector<1xf32> to vector<1x1x1xf32>
      %164 = vector.extract %163[0, 0, 0] : f32 from vector<1x1x1xf32>
      %165 = arith.addf %157, %164 : f32
      %cst_88 = arith.constant -5.000000e+01 : f32
      %166 = vector.broadcast %cst_88 : f32 to vector<8x8xf32>
      %167 = arith.mulf %166, %141 : vector<8x8xf32>
      %168 = math.exp %167 : vector<8x8xf32>
      %169 = vector.shape_cast %168 : vector<8x8xf32> to vector<1x8x8xf32>
      %cst_89 = arith.constant dense<0.000000e+00> : vector<1xf32>
      %170 = vector.multi_reduction <add>, %169, %cst_89 [1, 2] : vector<1x8x8xf32> to vector<1xf32>
      %171 = vector.shape_cast %170 : vector<1xf32> to vector<1x1x1xf32>
      %172 = vector.extract %171[0, 0, 0] : f32 from vector<1x1x1xf32>
      %173 = arith.addf %165, %172 : f32
      %cst_90 = arith.constant -1.250000e+01 : f32
      %174 = vector.broadcast %cst_90 : f32 to vector<8x8xf32>
      %175 = arith.mulf %174, %141 : vector<8x8xf32>
      %176 = math.exp %175 : vector<8x8xf32>
      %177 = vector.shape_cast %176 : vector<8x8xf32> to vector<1x8x8xf32>
      %cst_91 = arith.constant dense<0.000000e+00> : vector<1xf32>
      %178 = vector.multi_reduction <add>, %177, %cst_91 [1, 2] : vector<1x8x8xf32> to vector<1xf32>
      %179 = vector.shape_cast %178 : vector<1xf32> to vector<1x1x1xf32>
      %180 = vector.extract %179[0, 0, 0] : f32 from vector<1x1x1xf32>
      %181 = arith.addf %173, %180 : f32
      %cst_92 = arith.constant -5.000000e-01 : f32
      %182 = vector.broadcast %cst_92 : f32 to vector<8x8xf32>
      %183 = arith.mulf %182, %141 : vector<8x8xf32>
      %184 = math.exp %183 : vector<8x8xf32>
      %185 = vector.shape_cast %184 : vector<8x8xf32> to vector<1x8x8xf32>
      %cst_93 = arith.constant dense<0.000000e+00> : vector<1xf32>
      %186 = vector.multi_reduction <add>, %185, %cst_93 [1, 2] : vector<1x8x8xf32> to vector<1xf32>
      %187 = vector.shape_cast %186 : vector<1xf32> to vector<1x1x1xf32>
      %188 = vector.extract %187[0, 0, 0] : f32 from vector<1x1x1xf32>
      %189 = arith.addf %181, %188 : f32
      %cst_94 = arith.constant -1.250000e-01 : f32
      %190 = vector.broadcast %cst_94 : f32 to vector<8x8xf32>
      %191 = arith.mulf %190, %141 : vector<8x8xf32>
      %192 = math.exp %191 : vector<8x8xf32>
      %193 = vector.shape_cast %192 : vector<8x8xf32> to vector<1x8x8xf32>
      %cst_95 = arith.constant dense<0.000000e+00> : vector<1xf32>
      %194 = vector.multi_reduction <add>, %193, %cst_95 [1, 2] : vector<1x8x8xf32> to vector<1xf32>
      %195 = vector.shape_cast %194 : vector<1xf32> to vector<1x1x1xf32>
      %196 = vector.extract %195[0, 0, 0] : f32 from vector<1x1x1xf32>
      %197 = arith.addf %189, %196 : f32
      %c0_96 = arith.constant 0 : index
      %c0_97 = arith.constant 0 : index
      %198 = vector.load %arg8[%c0_96, %c0_97] : memref<8x8xf32, #tpu.memory_space<vmem>>, vector<8x8xf32>
      %199 = vector.broadcast %51 : vector<8x1xf32> to vector<8x8xf32>
      %200 = arith.mulf %198, %199 : vector<8x8xf32>
      %cst_98 = arith.constant dense<0.000000e+00> : vector<8x8xf32>
      %201 = tpu.matmul %47, %126, %cst_98 {dimension_numbers = #tpu.dot_dimension_numbers<[1], [1], [0], [0], [0, 0, 1, 0], [], []>} : vector<8x1xf32>, vector<8x1xf32>, vector<8x8xf32> -> vector<8x8xf32>
      %202 = arith.mulf %200, %201 : vector<8x8xf32>
      %cst_99 = arith.constant dense<0.000000e+00> : vector<8x8xf32>
      %203 = tpu.matmul %47, %128, %cst_99 {dimension_numbers = #tpu.dot_dimension_numbers<[1], [1], [0], [0], [0, 0, 1, 0], [], []>} : vector<8x1xf32>, vector<8x1xf32>, vector<8x8xf32> -> vector<8x8xf32>
      %204 = vector.broadcast %53 : vector<8x1xf32> to vector<8x8xf32>
      %205 = arith.addf %204, %203 : vector<8x8xf32>
      %cst_100 = arith.constant 2.000000e+00 : f32
      %206 = vector.broadcast %cst_100 : f32 to vector<8x8xf32>
      %207 = arith.mulf %206, %202 : vector<8x8xf32>
      %208 = arith.subf %205, %207 : vector<8x8xf32>
      %cst_101 = arith.constant 9.99999996E-13 : f32
      %209 = vector.broadcast %cst_101 : f32 to vector<8x8xf32>
      %210 = arith.maximumf %208, %209 : vector<8x8xf32>
      %cst_102 = arith.constant -5.000000e+05 : f32
      %211 = vector.broadcast %cst_102 : f32 to vector<8x8xf32>
      %212 = arith.mulf %211, %210 : vector<8x8xf32>
      %213 = math.exp %212 : vector<8x8xf32>
      %214 = vector.shape_cast %213 : vector<8x8xf32> to vector<1x8x8xf32>
      %cst_103 = arith.constant dense<0.000000e+00> : vector<1xf32>
      %215 = vector.multi_reduction <add>, %214, %cst_103 [1, 2] : vector<1x8x8xf32> to vector<1xf32>
      %216 = vector.shape_cast %215 : vector<1xf32> to vector<1x1x1xf32>
      %217 = vector.extract %216[0, 0, 0] : f32 from vector<1x1x1xf32>
      %cst_104 = arith.constant 0.000000e+00 : f32
      %218 = arith.addf %cst_104, %217 : f32
      %cst_105 = arith.constant -5.000000e+03 : f32
      %219 = vector.broadcast %cst_105 : f32 to vector<8x8xf32>
      %220 = arith.mulf %219, %210 : vector<8x8xf32>
      %221 = math.exp %220 : vector<8x8xf32>
      %222 = vector.shape_cast %221 : vector<8x8xf32> to vector<1x8x8xf32>
      %cst_106 = arith.constant dense<0.000000e+00> : vector<1xf32>
      %223 = vector.multi_reduction <add>, %222, %cst_106 [1, 2] : vector<1x8x8xf32> to vector<1xf32>
      %224 = vector.shape_cast %223 : vector<1xf32> to vector<1x1x1xf32>
      %225 = vector.extract %224[0, 0, 0] : f32 from vector<1x1x1xf32>
      %226 = arith.addf %218, %225 : f32
      %cst_107 = arith.constant -2.000000e+02 : f32
      %227 = vector.broadcast %cst_107 : f32 to vector<8x8xf32>
      %228 = arith.mulf %227, %210 : vector<8x8xf32>
      %229 = math.exp %228 : vector<8x8xf32>
      %230 = vector.shape_cast %229 : vector<8x8xf32> to vector<1x8x8xf32>
      %cst_108 = arith.constant dense<0.000000e+00> : vector<1xf32>
      %231 = vector.multi_reduction <add>, %230, %cst_108 [1, 2] : vector<1x8x8xf32> to vector<1xf32>
      %232 = vector.shape_cast %231 : vector<1xf32> to vector<1x1x1xf32>
      %233 = vector.extract %232[0, 0, 0] : f32 from vector<1x1x1xf32>
      %234 = arith.addf %226, %233 : f32
      %cst_109 = arith.constant -5.000000e+01 : f32
      %235 = vector.broadcast %cst_109 : f32 to vector<8x8xf32>
      %236 = arith.mulf %235, %210 : vector<8x8xf32>
      %237 = math.exp %236 : vector<8x8xf32>
      %238 = vector.shape_cast %237 : vector<8x8xf32> to vector<1x8x8xf32>
      %cst_110 = arith.constant dense<0.000000e+00> : vector<1xf32>
      %239 = vector.multi_reduction <add>, %238, %cst_110 [1, 2] : vector<1x8x8xf32> to vector<1xf32>
      %240 = vector.shape_cast %239 : vector<1xf32> to vector<1x1x1xf32>
      %241 = vector.extract %240[0, 0, 0] : f32 from vector<1x1x1xf32>
      %242 = arith.addf %234, %241 : f32
      %cst_111 = arith.constant -1.250000e+01 : f32
      %243 = vector.broadcast %cst_111 : f32 to vector<8x8xf32>
      %244 = arith.mulf %243, %210 : vector<8x8xf32>
      %245 = math.exp %244 : vector<8x8xf32>
      %246 = vector.shape_cast %245 : vector<8x8xf32> to vector<1x8x8xf32>
      %cst_112 = arith.constant dense<0.000000e+00> : vector<1xf32>
      %247 = vector.multi_reduction <add>, %246, %cst_112 [1, 2] : vector<1x8x8xf32> to vector<1xf32>
      %248 = vector.shape_cast %247 : vector<1xf32> to vector<1x1x1xf32>
      %249 = vector.extract %248[0, 0, 0] : f32 from vector<1x1x1xf32>
      %250 = arith.addf %242, %249 : f32
      %cst_113 = arith.constant -5.000000e-01 : f32
      %251 = vector.broadcast %cst_113 : f32 to vector<8x8xf32>
      %252 = arith.mulf %251, %210 : vector<8x8xf32>
      %253 = math.exp %252 : vector<8x8xf32>
      %254 = vector.shape_cast %253 : vector<8x8xf32> to vector<1x8x8xf32>
      %cst_114 = arith.constant dense<0.000000e+00> : vector<1xf32>
      %255 = vector.multi_reduction <add>, %254, %cst_114 [1, 2] : vector<1x8x8xf32> to vector<1xf32>
      %256 = vector.shape_cast %255 : vector<1xf32> to vector<1x1x1xf32>
      %257 = vector.extract %256[0, 0, 0] : f32 from vector<1x1x1xf32>
      %258 = arith.addf %250, %257 : f32
      %cst_115 = arith.constant -1.250000e-01 : f32
      %259 = vector.broadcast %cst_115 : f32 to vector<8x8xf32>
      %260 = arith.mulf %259, %210 : vector<8x8xf32>
      %261 = math.exp %260 : vector<8x8xf32>
      %262 = vector.shape_cast %261 : vector<8x8xf32> to vector<1x8x8xf32>
      %cst_116 = arith.constant dense<0.000000e+00> : vector<1xf32>
      %263 = vector.multi_reduction <add>, %262, %cst_116 [1, 2] : vector<1x8x8xf32> to vector<1xf32>
      %264 = vector.shape_cast %263 : vector<1xf32> to vector<1x1x1xf32>
      %265 = vector.extract %264[0, 0, 0] : f32 from vector<1x1x1xf32>
      %266 = arith.addf %258, %265 : f32
      %267 = arith.addf %122, %197 : f32
      %cst_117 = arith.constant 1.562500e-02 : f32
      %268 = arith.mulf %cst_117, %267 : f32
      %cst_118 = arith.constant 2.000000e+00 : f32
      %cst_119 = arith.constant 1.562500e-02 : f32
      %269 = arith.mulf %cst_118, %cst_119 : f32
      %270 = arith.mulf %269, %266 : f32
      %271 = arith.subf %268, %270 : f32
      %cst_120 = arith.constant 0.000000e+00 : f32
      %272 = arith.maximumf %271, %cst_120 : f32
      %cst_121 = arith.constant 0.000000e+00 : f32
      %273 = arith.addf %cst_121, %272 : f32
      %c0_122 = arith.constant 0 : index
      %c0_123 = arith.constant 0 : index
      %274 = vector.load %arg12[%c0_122, %c0_123] : memref<8x1xf32, #tpu.memory_space<vmem>>, vector<8x1xf32>
      %cst_124 = arith.constant 1.000000e-24 : f32
      %275 = vector.broadcast %cst_124 : f32 to vector<8x1xf32>
      %276 = arith.maximumf %274, %275 : vector<8x1xf32>
      %277 = math.rsqrt %276 : vector<8x1xf32>
      %278 = arith.mulf %274, %277 : vector<8x1xf32>
      %279 = arith.mulf %278, %277 : vector<8x1xf32>
      %c0_125 = arith.constant 0 : index
      %c0_126 = arith.constant 0 : index
      %280 = vector.load %arg7[%c0_125, %c0_126] : memref<8x8xf32, #tpu.memory_space<vmem>>, vector<8x8xf32>
      %281 = vector.broadcast %277 : vector<8x1xf32> to vector<8x8xf32>
      %282 = arith.mulf %280, %281 : vector<8x8xf32>
      %cst_127 = arith.constant dense<0.000000e+00> : vector<8x8xf32>
      %283 = tpu.matmul %47, %277, %cst_127 {dimension_numbers = #tpu.dot_dimension_numbers<[1], [1], [0], [0], [0, 0, 1, 0], [], []>} : vector<8x1xf32>, vector<8x1xf32>, vector<8x8xf32> -> vector<8x8xf32>
      %284 = arith.mulf %282, %283 : vector<8x8xf32>
      %cst_128 = arith.constant dense<0.000000e+00> : vector<8x8xf32>
      %285 = tpu.matmul %47, %279, %cst_128 {dimension_numbers = #tpu.dot_dimension_numbers<[1], [1], [0], [0], [0, 0, 1, 0], [], []>} : vector<8x1xf32>, vector<8x1xf32>, vector<8x8xf32> -> vector<8x8xf32>
      %286 = vector.broadcast %279 : vector<8x1xf32> to vector<8x8xf32>
      %287 = arith.addf %286, %285 : vector<8x8xf32>
      %cst_129 = arith.constant 2.000000e+00 : f32
      %288 = vector.broadcast %cst_129 : f32 to vector<8x8xf32>
      %289 = arith.mulf %288, %284 : vector<8x8xf32>
      %290 = arith.subf %287, %289 : vector<8x8xf32>
      %cst_130 = arith.constant 9.99999996E-13 : f32
      %291 = vector.broadcast %cst_130 : f32 to vector<8x8xf32>
      %292 = arith.maximumf %290, %291 : vector<8x8xf32>
      %cst_131 = arith.constant -5.000000e+05 : f32
      %293 = vector.broadcast %cst_131 : f32 to vector<8x8xf32>
      %294 = arith.mulf %293, %292 : vector<8x8xf32>
      %295 = math.exp %294 : vector<8x8xf32>
      %296 = vector.shape_cast %295 : vector<8x8xf32> to vector<1x8x8xf32>
      %cst_132 = arith.constant dense<0.000000e+00> : vector<1xf32>
      %297 = vector.multi_reduction <add>, %296, %cst_132 [1, 2] : vector<1x8x8xf32> to vector<1xf32>
      %298 = vector.shape_cast %297 : vector<1xf32> to vector<1x1x1xf32>
      %299 = vector.extract %298[0, 0, 0] : f32 from vector<1x1x1xf32>
      %cst_133 = arith.constant 0.000000e+00 : f32
      %300 = arith.addf %cst_133, %299 : f32
      %cst_134 = arith.constant -5.000000e+03 : f32
      %301 = vector.broadcast %cst_134 : f32 to vector<8x8xf32>
      %302 = arith.mulf %301, %292 : vector<8x8xf32>
      %303 = math.exp %302 : vector<8x8xf32>
      %304 = vector.shape_cast %303 : vector<8x8xf32> to vector<1x8x8xf32>
      %cst_135 = arith.constant dense<0.000000e+00> : vector<1xf32>
      %305 = vector.multi_reduction <add>, %304, %cst_135 [1, 2] : vector<1x8x8xf32> to vector<1xf32>
      %306 = vector.shape_cast %305 : vector<1xf32> to vector<1x1x1xf32>
      %307 = vector.extract %306[0, 0, 0] : f32 from vector<1x1x1xf32>
      %308 = arith.addf %300, %307 : f32
      %cst_136 = arith.constant -2.000000e+02 : f32
      %309 = vector.broadcast %cst_136 : f32 to vector<8x8xf32>
      %310 = arith.mulf %309, %292 : vector<8x8xf32>
      %311 = math.exp %310 : vector<8x8xf32>
      %312 = vector.shape_cast %311 : vector<8x8xf32> to vector<1x8x8xf32>
      %cst_137 = arith.constant dense<0.000000e+00> : vector<1xf32>
      %313 = vector.multi_reduction <add>, %312, %cst_137 [1, 2] : vector<1x8x8xf32> to vector<1xf32>
      %314 = vector.shape_cast %313 : vector<1xf32> to vector<1x1x1xf32>
      %315 = vector.extract %314[0, 0, 0] : f32 from vector<1x1x1xf32>
      %316 = arith.addf %308, %315 : f32
      %cst_138 = arith.constant -5.000000e+01 : f32
      %317 = vector.broadcast %cst_138 : f32 to vector<8x8xf32>
      %318 = arith.mulf %317, %292 : vector<8x8xf32>
      %319 = math.exp %318 : vector<8x8xf32>
      %320 = vector.shape_cast %319 : vector<8x8xf32> to vector<1x8x8xf32>
      %cst_139 = arith.constant dense<0.000000e+00> : vector<1xf32>
      %321 = vector.multi_reduction <add>, %320, %cst_139 [1, 2] : vector<1x8x8xf32> to vector<1xf32>
      %322 = vector.shape_cast %321 : vector<1xf32> to vector<1x1x1xf32>
      %323 = vector.extract %322[0, 0, 0] : f32 from vector<1x1x1xf32>
      %324 = arith.addf %316, %323 : f32
      %cst_140 = arith.constant -1.250000e+01 : f32
      %325 = vector.broadcast %cst_140 : f32 to vector<8x8xf32>
      %326 = arith.mulf %325, %292 : vector<8x8xf32>
      %327 = math.exp %326 : vector<8x8xf32>
      %328 = vector.shape_cast %327 : vector<8x8xf32> to vector<1x8x8xf32>
      %cst_141 = arith.constant dense<0.000000e+00> : vector<1xf32>
      %329 = vector.multi_reduction <add>, %328, %cst_141 [1, 2] : vector<1x8x8xf32> to vector<1xf32>
      %330 = vector.shape_cast %329 : vector<1xf32> to vector<1x1x1xf32>
      %331 = vector.extract %330[0, 0, 0] : f32 from vector<1x1x1xf32>
      %332 = arith.addf %324, %331 : f32
      %cst_142 = arith.constant -5.000000e-01 : f32
      %333 = vector.broadcast %cst_142 : f32 to vector<8x8xf32>
      %334 = arith.mulf %333, %292 : vector<8x8xf32>
      %335 = math.exp %334 : vector<8x8xf32>
      %336 = vector.shape_cast %335 : vector<8x8xf32> to vector<1x8x8xf32>
      %cst_143 = arith.constant dense<0.000000e+00> : vector<1xf32>
      %337 = vector.multi_reduction <add>, %336, %cst_143 [1, 2] : vector<1x8x8xf32> to vector<1xf32>
      %338 = vector.shape_cast %337 : vector<1xf32> to vector<1x1x1xf32>
      %339 = vector.extract %338[0, 0, 0] : f32 from vector<1x1x1xf32>
      %340 = arith.addf %332, %339 : f32
      %cst_144 = arith.constant -1.250000e-01 : f32
      %341 = vector.broadcast %cst_144 : f32 to vector<8x8xf32>
      %342 = arith.mulf %341, %292 : vector<8x8xf32>
      %343 = math.exp %342 : vector<8x8xf32>
      %344 = vector.shape_cast %343 : vector<8x8xf32> to vector<1x8x8xf32>
      %cst_145 = arith.constant dense<0.000000e+00> : vector<1xf32>
      %345 = vector.multi_reduction <add>, %344, %cst_145 [1, 2] : vector<1x8x8xf32> to vector<1xf32>
      %346 = vector.shape_cast %345 : vector<1xf32> to vector<1x1x1xf32>
      %347 = vector.extract %346[0, 0, 0] : f32 from vector<1x1x1xf32>
      %348 = arith.addf %340, %347 : f32
      %c0_146 = arith.constant 0 : index
      %c0_147 = arith.constant 0 : index
      %349 = vector.load %arg9[%c0_146, %c0_147] : memref<8x8xf32, #tpu.memory_space<vmem>>, vector<8x8xf32>
      %350 = vector.broadcast %51 : vector<8x1xf32> to vector<8x8xf32>
      %351 = arith.mulf %349, %350 : vector<8x8xf32>
      %cst_148 = arith.constant dense<0.000000e+00> : vector<8x8xf32>
      %352 = tpu.matmul %47, %277, %cst_148 {dimension_numbers = #tpu.dot_dimension_numbers<[1], [1], [0], [0], [0, 0, 1, 0], [], []>} : vector<8x1xf32>, vector<8x1xf32>, vector<8x8xf32> -> vector<8x8xf32>
      %353 = arith.mulf %351, %352 : vector<8x8xf32>
      %cst_149 = arith.constant dense<0.000000e+00> : vector<8x8xf32>
      %354 = tpu.matmul %47, %279, %cst_149 {dimension_numbers = #tpu.dot_dimension_numbers<[1], [1], [0], [0], [0, 0, 1, 0], [], []>} : vector<8x1xf32>, vector<8x1xf32>, vector<8x8xf32> -> vector<8x8xf32>
      %355 = vector.broadcast %53 : vector<8x1xf32> to vector<8x8xf32>
      %356 = arith.addf %355, %354 : vector<8x8xf32>
      %cst_150 = arith.constant 2.000000e+00 : f32
      %357 = vector.broadcast %cst_150 : f32 to vector<8x8xf32>
      %358 = arith.mulf %357, %353 : vector<8x8xf32>
      %359 = arith.subf %356, %358 : vector<8x8xf32>
      %cst_151 = arith.constant 9.99999996E-13 : f32
      %360 = vector.broadcast %cst_151 : f32 to vector<8x8xf32>
      %361 = arith.maximumf %359, %360 : vector<8x8xf32>
      %cst_152 = arith.constant -5.000000e+05 : f32
      %362 = vector.broadcast %cst_152 : f32 to vector<8x8xf32>
      %363 = arith.mulf %362, %361 : vector<8x8xf32>
      %364 = math.exp %363 : vector<8x8xf32>
      %365 = vector.shape_cast %364 : vector<8x8xf32> to vector<1x8x8xf32>
      %cst_153 = arith.constant dense<0.000000e+00> : vector<1xf32>
      %366 = vector.multi_reduction <add>, %365, %cst_153 [1, 2] : vector<1x8x8xf32> to vector<1xf32>
      %367 = vector.shape_cast %366 : vector<1xf32> to vector<1x1x1xf32>
      %368 = vector.extract %367[0, 0, 0] : f32 from vector<1x1x1xf32>
      %cst_154 = arith.constant 0.000000e+00 : f32
      %369 = arith.addf %cst_154, %368 : f32
      %cst_155 = arith.constant -5.000000e+03 : f32
      %370 = vector.broadcast %cst_155 : f32 to vector<8x8xf32>
      %371 = arith.mulf %370, %361 : vector<8x8xf32>
      %372 = math.exp %371 : vector<8x8xf32>
      %373 = vector.shape_cast %372 : vector<8x8xf32> to vector<1x8x8xf32>
      %cst_156 = arith.constant dense<0.000000e+00> : vector<1xf32>
      %374 = vector.multi_reduction <add>, %373, %cst_156 [1, 2] : vector<1x8x8xf32> to vector<1xf32>
      %375 = vector.shape_cast %374 : vector<1xf32> to vector<1x1x1xf32>
      %376 = vector.extract %375[0, 0, 0] : f32 from vector<1x1x1xf32>
      %377 = arith.addf %369, %376 : f32
      %cst_157 = arith.constant -2.000000e+02 : f32
      %378 = vector.broadcast %cst_157 : f32 to vector<8x8xf32>
      %379 = arith.mulf %378, %361 : vector<8x8xf32>
      %380 = math.exp %379 : vector<8x8xf32>
      %381 = vector.shape_cast %380 : vector<8x8xf32> to vector<1x8x8xf32>
      %cst_158 = arith.constant dense<0.000000e+00> : vector<1xf32>
      %382 = vector.multi_reduction <add>, %381, %cst_158 [1, 2] : vector<1x8x8xf32> to vector<1xf32>
      %383 = vector.shape_cast %382 : vector<1xf32> to vector<1x1x1xf32>
      %384 = vector.extract %383[0, 0, 0] : f32 from vector<1x1x1xf32>
      %385 = arith.addf %377, %384 : f32
      %cst_159 = arith.constant -5.000000e+01 : f32
      %386 = vector.broadcast %cst_159 : f32 to vector<8x8xf32>
      %387 = arith.mulf %386, %361 : vector<8x8xf32>
      %388 = math.exp %387 : vector<8x8xf32>
      %389 = vector.shape_cast %388 : vector<8x8xf32> to vector<1x8x8xf32>
      %cst_160 = arith.constant dense<0.000000e+00> : vector<1xf32>
      %390 = vector.multi_reduction <add>, %389, %cst_160 [1, 2] : vector<1x8x8xf32> to vector<1xf32>
      %391 = vector.shape_cast %390 : vector<1xf32> to vector<1x1x1xf32>
      %392 = vector.extract %391[0, 0, 0] : f32 from vector<1x1x1xf32>
      %393 = arith.addf %385, %392 : f32
      %cst_161 = arith.constant -1.250000e+01 : f32
      %394 = vector.broadcast %cst_161 : f32 to vector<8x8xf32>
      %395 = arith.mulf %394, %361 : vector<8x8xf32>
      %396 = math.exp %395 : vector<8x8xf32>
      %397 = vector.shape_cast %396 : vector<8x8xf32> to vector<1x8x8xf32>
      %cst_162 = arith.constant dense<0.000000e+00> : vector<1xf32>
      %398 = vector.multi_reduction <add>, %397, %cst_162 [1, 2] : vector<1x8x8xf32> to vector<1xf32>
      %399 = vector.shape_cast %398 : vector<1xf32> to vector<1x1x1xf32>
      %400 = vector.extract %399[0, 0, 0] : f32 from vector<1x1x1xf32>
      %401 = arith.addf %393, %400 : f32
      %cst_163 = arith.constant -5.000000e-01 : f32
      %402 = vector.broadcast %cst_163 : f32 to vector<8x8xf32>
      %403 = arith.mulf %402, %361 : vector<8x8xf32>
      %404 = math.exp %403 : vector<8x8xf32>
      %405 = vector.shape_cast %404 : vector<8x8xf32> to vector<1x8x8xf32>
      %cst_164 = arith.constant dense<0.000000e+00> : vector<1xf32>
      %406 = vector.multi_reduction <add>, %405, %cst_164 [1, 2] : vector<1x8x8xf32> to vector<1xf32>
      %407 = vector.shape_cast %406 : vector<1xf32> to vector<1x1x1xf32>
      %408 = vector.extract %407[0, 0, 0] : f32 from vector<1x1x1xf32>
      %409 = arith.addf %401, %408 : f32
      %cst_165 = arith.constant -1.250000e-01 : f32
      %410 = vector.broadcast %cst_165 : f32 to vector<8x8xf32>
      %411 = arith.mulf %410, %361 : vector<8x8xf32>
      %412 = math.exp %411 : vector<8x8xf32>
      %413 = vector.shape_cast %412 : vector<8x8xf32> to vector<1x8x8xf32>
      %cst_166 = arith.constant dense<0.000000e+00> : vector<1xf32>
      %414 = vector.multi_reduction <add>, %413, %cst_166 [1, 2] : vector<1x8x8xf32> to vector<1xf32>
      %415 = vector.shape_cast %414 : vector<1xf32> to vector<1x1x1xf32>
      %416 = vector.extract %415[0, 0, 0] : f32 from vector<1x1x1xf32>
      %417 = arith.addf %409, %416 : f32
      %418 = arith.addf %122, %348 : f32
      %cst_167 = arith.constant 1.562500e-02 : f32
      %419 = arith.mulf %cst_167, %418 : f32
      %cst_168 = arith.constant 2.000000e+00 : f32
      %cst_169 = arith.constant 1.562500e-02 : f32
      %420 = arith.mulf %cst_168, %cst_169 : f32
      %421 = arith.mulf %420, %417 : f32
      %422 = arith.subf %419, %421 : f32
      %cst_170 = arith.constant 0.000000e+00 : f32
      %423 = arith.maximumf %422, %cst_170 : f32
      %424 = arith.addf %273, %423 : f32
      %425 = vector.broadcast %424 : f32 to vector<1x1xf32>
      %c0_171 = arith.constant 0 : index
      %c0_172 = arith.constant 0 : index
      %426 = vector.load %arg4[%c0_171, %c0_172] : memref<1x1xf32, #tpu.memory_space<vmem>>, vector<1x1xf32>
      tpu.vector_store %arg4[%c0_171, %c0_172], %425 {strides = array<i32>} : memref<1x1xf32, #tpu.memory_space<vmem>>, vector<1x1xf32>,
    } else {
    }
    return
  }
  func.func @transform_0(%arg0: i32) -> (i32, i32) {
    %c0_i32 = arith.constant 0 : i32
    %c0_i32_0 = arith.constant 0 : i32
    return %c0_i32, %arg0 : i32, i32
  }
  func.func @transform_1(%arg0: i32) -> (i32, i32) {
    %c0_i32 = arith.constant 0 : i32
    %c0_i32_0 = arith.constant 0 : i32
    return %c0_i32, %arg0 : i32, i32
  }
  func.func @transform_2(%arg0: i32) -> (i32, i32) {
    %c0_i32 = arith.constant 0 : i32
    %c0_i32_0 = arith.constant 0 : i32
    return %c0_i32, %arg0 : i32, i32
  }
  func.func @transform_3(%arg0: i32) -> (i32, i32) {
    %c0_i32 = arith.constant 0 : i32
    %c0_i32_0 = arith.constant 0 : i32
    %c0_i32_1 = arith.constant 0 : i32
    return %c0_i32, %c0_i32_0 : i32, i32
  }
}

</mosaic_0001>

<bundles_post_ra>
// kernel: tpu_custom_call.1
= control target key start
LH: loop header
LB: loop body
LE: loop exit
PB: predicated region body
PF: predicated region fallthrough
CT: control target
= control target key end

     0   :  { %s3295_s0 = inlined_call_operand.hbm [shape: f32[8,1024], index: 0, kind: input, shape index: {}]   ;;  %s3296_s1 = inlined_call_operand.hbm [shape: f32[8,1024], index: 1, kind: input, shape index: {}]   ;;  %s3297_s2 = inlined_call_operand.hbm [shape: f32[8,1024], index: 2, kind: input, shape index: {}]   ;;  %s3298_s3 = inlined_call_operand.hbm [shape: f32[1,1], index: 3, kind: output, shape index: {}]  }
   0x1   :  { %3300 = sst [smem:[#allocation21_spill]] %s3298_s3 }
   0x2   :  { %8 = vsyncpa [#allocation11], 0 }
   0x3   :  { %9 = vsyncpa [#allocation14], 0 }
   0x4   :  { %10 = vsyncpa [#allocation12], 0  ;;  %s2911_s12 = smov [#allocation13]   ;;  %s2912_s14 = smov [#allocation10]  }
   0x5   :  { %s27_s13 = sshll.u32 %s2911_s12, 4  ;;  %s17_s15 = sshll.u32 %s2912_s14, 4  ;;  %s28_s13 = int_to_ptr.vmem [resolvable:$true] %s27_s13  ;;  %s18_s15 = int_to_ptr.vmem [resolvable:$true] %s17_s15 }
   0x6   :  { %s2817_s18 = scalar_lea.hbm %s3296_s1, 1024 }
   0x7   :  { %p2818_p0 = scmp.ne.s32.totalorder %s3296_s1, %s2817_s18  ;;  %p2821_p1 = scmp.lt.u32.totalorder %s2817_s18, %s3296_s1 }
   0x9   :  { %p2823_p2 = pnand %p2821_p1, %p2818_p0 }
   0xb   :  { %2826 = shalt.err (!%p2823_p2)
}
   0xc   :  { %s2827_s23 = scalar_lea.vmem %s28_s13, 1024  ;;  %p2832_p4 = scmp.lt.s32.totalorder %s28_s13, %s28_s13 }
   0xd   :  { %p2828_p3 = scmp.ne.s32.totalorder %s28_s13, %s2827_s23  ;;  %p2833_p5 = scmp.lt.s32.totalorder %s2827_s23, %s2827_s23 }
   0xf   :  { %p2834_p6 = por %p2833_p5, %p2832_p4 }
  0x11   :  { %p2835_p7 = pnand %p2834_p6, %p2828_p3 }
  0x13   :  { %2838 = shalt.err (!%p2835_p7)
}
  0x14   :  { %30 = dma.hbm_to_vmem [thread:$0]  %s3296_s1, 1024, %s28_s13, [#allocation14]  }
  0x15   :  { %s2839_s28 = scalar_lea.hbm %s3295_s0, 1024 }
  0x16   :  { %p2840_p8 = scmp.ne.s32.totalorder %s3295_s0, %s2839_s28  ;;  %p2843_p9 = scmp.lt.u32.totalorder %s2839_s28, %s3295_s0 }
  0x18   :  { %p2845_p10 = pnand %p2843_p9, %p2840_p8 }
  0x1a   :  { %2848 = shalt.err (!%p2845_p10)
}
  0x1b   :  { %s2849_s6 = scalar_lea.vmem %s18_s15, 1024  ;;  %p2854_p12 = scmp.lt.s32.totalorder %s18_s15, %s18_s15 }
  0x1c   :  { %p2850_p11 = scmp.ne.s32.totalorder %s18_s15, %s2849_s6  ;;  %p2855_p13 = scmp.lt.s32.totalorder %s2849_s6, %s2849_s6 }
  0x1e   :  { %p2856_p0 = por %p2855_p13, %p2854_p12 }
  0x20   :  { %p2857_p1 = pnand %p2856_p0, %p2850_p11 }
  0x22   :  { %2860 = shalt.err (!%p2857_p1)
}
  0x23   :  { %20 = dma.hbm_to_vmem [thread:$0]  %s3295_s0, 1024, %s18_s15, [#allocation11]  }
  0x24   :  { %s2913_s8 = smov [#allocation15]   ;;  %s2861_s12 = scalar_lea.hbm %s3297_s2, 1024 }
  0x25   :  { %s37_s9 = sshll.u32 %s2913_s8, 4  ;;  %p2862_p2 = scmp.ne.s32.totalorder %s3297_s2, %s2861_s12  ;;  %s38_s9 = int_to_ptr.vmem [resolvable:$true] %s37_s9 }
  0x26   :  { %p2865_p3 = scmp.lt.u32.totalorder %s2861_s12, %s3297_s2 }
  0x28   :  { %p2867_p4 = pnand %p2865_p3, %p2862_p2 }
  0x2a   :  { %2870 = shalt.err (!%p2867_p4)
}
  0x2b   :  { %s2871_s18 = scalar_lea.vmem %s38_s9, 1024  ;;  %p2876_p6 = scmp.lt.s32.totalorder %s38_s9, %s38_s9 }
  0x2c   :  { %p2872_p5 = scmp.ne.s32.totalorder %s38_s9, %s2871_s18  ;;  %p2877_p7 = scmp.lt.s32.totalorder %s2871_s18, %s2871_s18 }
  0x2e   :  { %p2878_p8 = por %p2877_p7, %p2876_p6 }
  0x30   :  { %p2879_p9 = pnand %p2878_p8, %p2872_p5 }
  0x32   :  { %2882 = shalt.err (!%p2879_p9)
}
  0x33   :  { %40 = dma.hbm_to_vmem [thread:$0]  %s3297_s2, 1024, %s38_s9, [#allocation14]  }
  0x34   :  { %2905 = dma.done.wait [#allocation11], 1024  }
  0x35   :  { %2906 = vsyncadd [#allocation11], 4294966272 }
  0x36   :  { %2907 = dma.done.wait [#allocation14], 2048  }
  0x37   :  { %2908 = vsyncadd [#allocation14], 4294965248  ;;  %vm62_vm0 = vcmask 7168   ;;  %v2914_v0 = vmov 0.0   ;;  %v2982_v1 = vld [vmem:[#allocation10] sm:$0xff]  ;;  %v2984_v2 = vld [vmem:[#allocation10 + $0x8] sm:$0xff] }
  0x38   :  { %63 = vst.msk [vmem:[#allocation7] sm:$0xff] %vm62_vm0, %v2914_v0  ;;  %64 = vst.msk [vmem:[#allocation8] sm:$0xff] %vm62_vm0, %v2914_v0  ;;  %v2986_v3 = vld [vmem:[#allocation10 + $0x10] sm:$0xff]  ;;  %v2988_v4 = vld [vmem:[#allocation10 + $0x18] sm:$0xff]  ;;  %v359_v5 = vmul.f32 %v2982_v1, %v2982_v1  ;;  %v360_v6 = vmul.f32 %v2984_v2, %v2984_v2  ;;  %75 = vmatprep.subr.mxu0 %v2984_v2  ;;  %139 = vmatprep.mubr.f32.mxu0 %v2984_v2  ;;  %vm2916_vm1 = vmmov 0   ;;  %vm56_vm2 = vcmask 64512  }
  0x39   :  { %65 = vst.msk [vmem:[#allocation9] sm:$0xff] %vm62_vm0, %v2914_v0  ;;  %v361_v7 = vmul.f32 %v2986_v3, %v2986_v3  ;;  %v2998_v8 = vld [vmem:[#allocation10 + $0x20] sm:$0xff]  ;;  %v3000_v9 = vld [vmem:[#allocation10 + $0x28] sm:$0xff]  ;;  %76 = vmatpush1.xpose.msra.mxu0 %v2982_v1  ;;  %145 = vmatprep.subr.mxu1 %v2988_v4  ;;  %v362_v11 = vmul.f32 %v2988_v4, %v2988_v4  ;;  %v3010_v14 = vld [vmem:[#allocation15 + $0x10] sm:$0xff]  ;;  %vm54_vm3 = vcmask 0  }
  0x3a   :  { %v3002_v10 = vld [vmem:[#allocation15] sm:$0xff]  ;;  %v367_v12 = vadd.f32 %v360_v6, %v359_v5  ;;  %v3008_v13 = vld [vmem:[#allocation15 + $0x8] sm:$0xff]  ;;  %v3012_v15 = vld [vmem:[#allocation15 + $0x18] sm:$0xff]  ;;  %146 = vmatpush1.xpose.msra.mxu1 %v2986_v3  ;;  %v1550_v19 = vmul.f32 %v3010_v14, %v3010_v14  ;;  %215 = vmatprep.subr.mxu0 %v3000_v9  ;;  %v363_v20 = vmul.f32 %v2998_v8, %v2998_v8 }
  0x3b   :  { %v1548_v16 = vmul.f32 %v3002_v10, %v3002_v10  ;;  %v3017_v17 = vld [vmem:[#allocation10 + $0x30] sm:$0xff]  ;;  %v1549_v18 = vmul.f32 %v3008_v13, %v3008_v13  ;;  %209 = vmatprep.mubr.f32.mxu1 %v2988_v4  ;;  %v3027_v22 = vld [vmem:[#allocation15 + $0x20] sm:$0xff]  ;;  %v3031_v24 = vld [vmem:[#allocation13 + $0x8] sm:$0xff]  ;;  %v1551_v25 = vmul.f32 %v3012_v15, %v3012_v15  ;;  %v364_v32 = vmul.f32 %v3000_v9, %v3000_v9 }
  0x3c   :  { %v368_v21 = vadd.f32 %v367_v12, %v361_v7  ;;  %v3029_v23 = vld [vmem:[#allocation13] sm:$0xff]  ;;  %140 = vmatmul.mubr.f32.vlgmr.msra.gmra.mrb[0].mxu0 %v2982_v1  ;;  %v3036_v27 = vld [vmem:[#allocation13 + $0x10] sm:$0xff]  ;;  %v3038_v28 = vld [vmem:[#allocation13 + $0x18] sm:$0xff]  ;;  %v955_v30 = vmul.f32 %v3031_v24, %v3031_v24  ;;  %v365_v36 = vmul.f32 %v3017_v17, %v3017_v17  ;;  %v1552_v37 = vmul.f32 %v3027_v22, %v3027_v22 }
  0x3d   :  { %v1556_v26 = vadd.f32 %v1549_v18, %v1548_v16  ;;  %v954_v29 = vmul.f32 %v3029_v23, %v3029_v23  ;;  %216 = vmatpush1.xpose.msra.mxu0 %v2998_v8  ;;  %v3045_v31 = vld [vmem:[#allocation10 + $0x38] sm:$0xff]  ;;  %v3049_v34 = vld [vmem:[#allocation15 + $0x28] sm:$0xff]  ;;  %v956_v35 = vmul.f32 %v3036_v27, %v3036_v27  ;;  %210 = vmatmul.mubr.f32.vlgmr.msra.gmra.mrb[0].mxu1 %v2986_v3  ;;  %v3058_v39 = vld [vmem:[#allocation13 + $0x20] sm:$0xff] }
  0x3e   :  { %v369_v33 = vadd.f32 %v368_v21, %v362_v11  ;;  %285 = vmatprep.subr.mxu1 %v3045_v31  ;;  %v3061_v41 = vld [vmem:[#allocation15 + $0x30] sm:$0xff]  ;;  %v957_v42 = vmul.f32 %v3038_v28, %v3038_v28  ;;  %279 = vmatprep.mubr.f32.mxu0 %v3000_v9  ;;  %v366_v44 = vmul.f32 %v3045_v31, %v3045_v31  ;;  %v384_v47 = vld [vmem:[#allocation13 + $0x28] sm:$0xff]  ;;  %v3073_v49 = vld [vmem:[#allocation15 + $0x38] sm:$0xff] }
  0x3f   :  { %v1557_v38 = vadd.f32 %v1556_v26, %v1550_v19  ;;  %v962_v43 = vadd.f32 %v955_v30, %v954_v29  ;;  %286 = vmatpush1.xpose.msra.mxu1 %v3017_v17  ;;  %v1553_v45 = vmul.f32 %v3049_v34, %v3049_v34  ;;  %388 = vmatprep.subr.mxu0 %v3031_v24  ;;  %v385_v54 = vld [vmem:[#allocation13 + $0x30] sm:$0xff]  ;;  %v386_v60 = vld [vmem:[#allocation13 + $0x38] sm:$0xff] }
  0x40   :  { %v370_v40 = vadd.f32 %v369_v33, %v363_v20  ;;  %280 = vmatmul.mubr.f32.vlgmr.msra.gmra.mrb[2].mxu0 %v2998_v8  ;;  %v958_v50 = vmul.f32 %v3058_v39, %v3058_v39  ;;  %349 = vmatprep.mubr.f32.mxu1 %v3045_v31  ;;  %v1554_v52 = vmul.f32 %v3061_v41, %v3061_v41 }
  0x41   :  { %v1558_v46 = vadd.f32 %v1557_v38, %v1551_v25  ;;  %v963_v51 = vadd.f32 %v962_v43, %v956_v35  ;;  %389 = vmatpush1.xpose.msra.mxu0 %v3029_v23  ;;  %458 = vmatprep.subr.mxu1 %v3038_v28  ;;  %v959_v56 = vmul.f32 %v384_v47, %v384_v47 }
  0x42   :  { %v371_v48 = vadd.f32 %v370_v40, %v364_v32  ;;  %350 = vmatmul.mubr.f32.vlgmr.msra.gmra.mrb[2].mxu1 %v3017_v17  ;;  %452 = vmatprep.mubr.f32.mxu0 %v3031_v24  ;;  %v1555_v58 = vmul.f32 %v3073_v49, %v3073_v49  ;;  %v960_v62 = vmul.f32 %v385_v54, %v385_v54 }
  0x43   :  { %v1559_v53 = vadd.f32 %v1558_v46, %v1552_v37  ;;  %v964_v57 = vadd.f32 %v963_v51, %v957_v42  ;;  %459 = vmatpush1.xpose.msra.mxu1 %v3036_v27  ;;  %528 = vmatprep.subr.mxu0 %v384_v47  ;;  %v961_v6 = vmul.f32 %v386_v60, %v386_v60 }
  0x44   :  { %v372_v55 = vadd.f32 %v371_v48, %v365_v36  ;;  %453 = vmatmul.mubr.f32.vlgmr.msra.gmra.mrb[4].mxu0 %v3029_v23  ;;  %522 = vmatprep.mubr.f32.mxu1 %v3038_v28  ;;  %57 = vst.msk [vmem:[#allocation2] sm:$0xff] %vm56_vm2, %v2914_v0  ;;  %58 = vst.msk [vmem:[#allocation3] sm:$0xff] %vm56_vm2, %v2914_v0 }
  0x45   :  { %v1560_v59 = vadd.f32 %v1559_v53, %v1553_v45  ;;  %v965_v63 = vadd.f32 %v964_v57, %v958_v50  ;;  %529 = vmatpush1.xpose.msra.mxu0 %v3058_v39  ;;  %598 = vmatprep.subr.mxu1 %v386_v60  ;;  %59 = vst.msk [vmem:[#allocation4] sm:$0xff] %vm56_vm2, %v2914_v0  ;;  %60 = vst.msk [vmem:[#allocation5] sm:$0xff] %vm56_vm2, %v2914_v0 }
  0x46   :  { %v373_v61 = vadd.f32 %v372_v55, %v366_v44  ;;  %523 = vmatmul.mubr.f32.vlgmr.msra.gmra.mrb[4].mxu1 %v3036_v27  ;;  %592 = vmatprep.mubr.f32.mxu0 %v384_v47  ;;  %61 = vst.msk [vmem:[#allocation6] sm:$0xff] %vm56_vm2, %v2914_v0 }
  0x47   :  { %v1561_v5 = vadd.f32 %v1560_v59, %v1554_v52  ;;  %v966_v7 = vadd.f32 %v965_v63, %v959_v56  ;;  %599 = vmatpush1.xpose.msra.mxu1 %v385_v54  ;;  %671 = vmatprep.subr.mxu0 %v3031_v24  ;;  %55 = vst.msk [vmem:[#allocation16] sm:$0x1] %vm54_vm3, %v2914_v0 }
  0x48   :  { %374 = vadd.xlane.f32.xlu0 %v373_v61  ;;  %593 = vmatmul.mubr.f32.vlgmr.msra.gmra.mrb[6].mxu0 %v3058_v39 }
  0x49   :  { %v1562_v11 = vadd.f32 %v1561_v5, %v1555_v58  ;;  %v967_v12 = vadd.f32 %v966_v7, %v960_v62  ;;  %662 = vmatprep.mubr.f32.mxu1 %v386_v60  ;;  %672 = vmatpush1.xpose.msra.mxu0 %v3029_v23 }
  0x4a   :  { %663 = vmatmul.mubr.f32.vlgmr.msra.gmra.mrb[6].mxu1 %v385_v54  ;;  %741 = vmatprep.subr.mxu1 %v3038_v28 }
  0x4b   :  { %1563 = vadd.xlane.f32.xlu1 %v1562_v11  ;;  %v968_v16 = vadd.f32 %v967_v12, %v961_v6  ;;  %735 = vmatprep.mubr.f32.mxu0 %v2984_v2 }
  0x4c   :  { %742 = vmatpush1.xpose.msra.mxu1 %v3036_v27  ;;  %736 = vmatmul.mubr.f32.vlgmr.msra.gmra.mrb[8].mxu0 %v2982_v1  ;;  %v2917_v27 = vmov 1.0   ;;  %v670_v11 = vld [vmem:[#allocation5] sm:$0xff] }
  0x4d   :  { %969 = vadd.xlane.f32.xlu0 %v968_v16  ;;  %811 = vmatprep.subr.mxu0 %v384_v47 }
  0x4e   :  { %805 = vmatprep.mubr.f32.mxu1 %v2988_v4  ;;  %812 = vmatpush1.xpose.msra.mxu0 %v3058_v39 }
  0x4f   :  { %806 = vmatmul.mubr.f32.vlgmr.msra.gmra.mrb[8].mxu1 %v2986_v3  ;;  %881 = vmatprep.subr.mxu1 %v386_v60 }
  0x50   :  { %875 = vmatprep.mubr.f32.mxu0 %v3000_v9  ;;  %882 = vmatpush1.xpose.msra.mxu1 %v385_v54  ;;  %v387_v54 = vld [vmem:[#allocation3] sm:$0xff] }
  0x51   :  { %982 = vmatprep.subr.mxu0 %v3008_v13  ;;  %876 = vmatmul.mubr.f32.vlgmr.msra.gmra.mrb[10].mxu0 %v2998_v8 }
  0x52   :  { %945 = vmatprep.mubr.f32.mxu1 %v3045_v31  ;;  %983 = vmatpush1.xpose.msra.mxu0 %v3002_v10 }
  0x53   :  { %1052 = vmatprep.subr.mxu1 %v3012_v15  ;;  %946 = vmatmul.mubr.f32.vlgmr.msra.gmra.mrb[10].mxu1 %v3017_v17 }
  0x54   :  { %1046 = vmatprep.mubr.f32.mxu0 %v3008_v13  ;;  %1053 = vmatpush1.xpose.msra.mxu1 %v3010_v14 }
  0x55   :  { %1122 = vmatprep.subr.mxu0 %v3049_v34  ;;  %1047 = vmatmul.mubr.f32.vlgmr.msra.gmra.mrb[12].mxu0 %v3002_v10 }
  0x56   :  { %1116 = vmatprep.mubr.f32.mxu1 %v3012_v15  ;;  %1123 = vmatpush1.xpose.msra.mxu0 %v3027_v22 }
  0x57   :  { %1192 = vmatprep.subr.mxu1 %v3073_v49  ;;  %1117 = vmatmul.mubr.f32.vlgmr.msra.gmra.mrb[12].mxu1 %v3010_v14 }
  0x58   :  { %1186 = vmatprep.mubr.f32.mxu0 %v3049_v34  ;;  %1193 = vmatpush1.xpose.msra.mxu1 %v3061_v41 }
  0x59   :  { %1265 = vmatprep.subr.mxu0 %v3008_v13  ;;  %1187 = vmatmul.mubr.f32.vlgmr.msra.gmra.mrb[14].mxu0 %v3027_v22  ;;  %v953_v13 = vld [vmem:[#allocation8] sm:$0xff] }
  0x5a   :  { %1256 = vmatprep.mubr.f32.mxu1 %v3073_v49  ;;  %1266 = vmatpush1.xpose.msra.mxu0 %v3002_v10 }
  0x5b   :  { %1335 = vmatprep.subr.mxu1 %v3012_v15  ;;  %1257 = vmatmul.mubr.f32.vlgmr.msra.gmra.mrb[14].mxu1 %v3061_v41 }
  0x5c   :  { %1329 = vmatprep.mubr.f32.mxu0 %v2984_v2  ;;  %1336 = vmatpush1.xpose.msra.mxu1 %v3010_v14  ;;  %v358_v2 = vld [vmem:[#allocation7] sm:$0xff] }
  0x5d   :  { %1405 = vmatprep.subr.mxu0 %v3049_v34  ;;  %1330 = vmatmul.mubr.f32.vlgmr.msra.gmra.mrb[16].mxu0 %v2982_v1  ;;  %v2915_v1 = vmov 0  }
  0x5e   :  { %1399 = vmatprep.mubr.f32.mxu1 %v2988_v4  ;;  %1406 = vmatpush1.xpose.msra.mxu0 %v3027_v22 }
  0x5f   :  { %1475 = vmatprep.subr.mxu1 %v3073_v49  ;;  %1400 = vmatmul.mubr.f32.vlgmr.msra.gmra.mrb[16].mxu1 %v2986_v3 }
  0x60   :  { %1469 = vmatprep.mubr.f32.mxu0 %v3000_v9  ;;  %1476 = vmatpush1.xpose.msra.mxu1 %v3061_v41  ;;  %v74_v41 = vld [vmem:[#allocation2] sm:$0xff] }
  0x61   :  { %1539 = vmatprep.mubr.f32.mxu1 %v3045_v31  ;;  %1470 = vmatmul.mubr.f32.vlgmr.msra.gmra.mrb[18].mxu0 %v2998_v8  ;;  %v1547_v8 = vld [vmem:[#allocation9] sm:$0xff] }
  0x62   :  { %2630 = vmatprep.subr.mxu0 %v2914_v0  ;;  %2635 = vmatprep.subr.mxu1 %v2914_v0 }
  0x63   :  { %1540 = vmatmul.mubr.f32.vlgmr.msra.gmra.mrb[18].mxu1 %v3017_v17  ;;  %2739 = vset.pattern.permute.xlu1 %v2915_v1 }
  0x64   :  { %2740 = vset.pattern.permute.xlu0 %v2915_v1  ;;  %2632 = vmatprep.mubr.msk.f32.mxu0 %vm2916_vm1, %v2914_v0 }
  0x65   :  { %2637 = vmatprep.mubr.msk.f32.mxu1 %vm2916_vm1, %v2914_v0 }
  0xd5   :  { %v375_v3 = vpop.xlane.xlu0 %374 }
  0xd6   :  { %v376_v4 = vadd.f32 %v375_v3, %v358_v2 }
  0xd8   :  { %378 = vst.msk [vmem:[#allocation7] sm:$0xff] %vm62_vm0, %v376_v4  ;;  %v1564_v9 = vpop.xlane.xlu1 %1563 }
  0xd9   :  { %v1565_v10 = vadd.f32 %v1564_v9, %v1547_v8 }
  0xda   :  { %v970_v14 = vpop.xlane.xlu0 %969 }
  0xdb   :  { %1566 = vst.msk [vmem:[#allocation9] sm:$0xff] %vm62_vm0, %v1565_v10  ;;  %v971_v15 = vadd.f32 %v970_v14, %v953_v13 }
  0xdd   :  { %972 = vst.msk [vmem:[#allocation8] sm:$0xff] %vm62_vm0, %v971_v15 }
  0xdf   :  { %v1570_v17 = vld [vmem:[#allocation7] sm:$0xff] }
  0xe0   :  { %v1571_v18 = vmax.f32 %v1570_v17, 1e-24 }
  0xe2   :  { %2741 = vrsqrt.f32 %v1571_v18  ;;  %v2212_v19 = vld [vmem:[#allocation9] sm:$0xff] }
  0xe3   :  { %v2213_v20 = vmax.f32 %v2212_v19, 1e-24 }
  0xe4   :  { %v1837_v21 = vld [vmem:[#allocation8] sm:$0xff] }
  0xe5   :  { %2743 = vrsqrt.f32 %v2213_v20  ;;  %v1838_v22 = vmax.f32 %v1837_v21, 1e-24 }
  0xe7   :  { %2745 = vrsqrt.f32 %v1838_v22 }
  0xec   :  { %v2742_v23 = vpop.eup %2741 }
  0xed   :  { %1578 = vperm.xlu1 %2739, %v2742_v23   ;;  %2631 = vmatpush3.xpose.msk.msra.mxu0 %vm62_vm0, %v2742_v23  ;;  %v1573_v24 = vmul.f32 %v2742_v23, %v1570_v17  ;;  %v981_v17 = vld [vmem:[#allocation4] sm:$0xff] }
  0xee   :  { %2640 = vmatprep.subr.mxu0 %v2914_v0 }
  0xef   :  { %v2744_v25 = vpop.eup %2743  ;;  %v1574_v26 = vmul.f32 %v2742_v23, %v1573_v24 }
  0xf0   :  { %2633 = vmatmul.mubr.msk.f32.vlgmr.msra.gmra.mrb[20].mxu0 %vm62_vm0, %v2917_v27  ;;  %v2215_v30 = vmul.f32 %v2744_v25, %v2212_v19 }
  0xf1   :  { %2220 = vperm.xlu1 %2739, %v2744_v25   ;;  %2636 = vmatpush3.xpose.msk.msra.mxu1 %vm62_vm0, %v1574_v26  ;;  %v2746_v28 = vpop.eup %2745 }
  0xf2   :  { %2642 = vmatprep.mubr.msk.f32.mxu0 %vm2916_vm1, %v2914_v0  ;;  %2645 = vmatprep.subr.mxu1 %v2914_v0  ;;  %v1840_v29 = vmul.f32 %v2746_v28, %v1837_v21  ;;  %v2216_v32 = vmul.f32 %v2744_v25, %v2215_v30  ;;  %v1264_v30 = vld [vmem:[#allocation6] sm:$0xff] }
  0xf3   :  { %2641 = vmatpush3.xpose.msk.msra.mxu0 %vm62_vm0, %v2746_v28  ;;  %1845 = vperm.xlu0 %2740, %v2746_v28  }
  0xf4   :  { %2638 = vmatmul.mubr.msk.f32.vlgmr.msra.gmra.mrb[20].mxu1 %vm62_vm0, %v2917_v27  ;;  %2650 = vmatprep.subr.mxu0 %v2914_v0  ;;  %v1841_v31 = vmul.f32 %v2746_v28, %v1840_v29 }
  0xf5   :  { %1732 = vperm.xlu1 %2739, %v1574_v26   ;;  %2647 = vmatprep.mubr.msk.f32.mxu1 %vm2916_vm1, %v2914_v0 }
  0xf6   :  { %2643 = vmatmul.mubr.msk.f32.vlgmr.msra.gmra.mrb[22].mxu0 %vm62_vm0, %v2917_v27  ;;  %2646 = vmatpush3.xpose.msk.msra.mxu1 %vm62_vm0, %v1841_v31 }
  0xf7   :  { %2651 = vmatpush3.xpose.msk.msra.mxu0 %vm62_vm0, %v2744_v25  ;;  %2652 = vmatprep.mubr.msk.f32.mxu0 %vm2916_vm1, %v2914_v0 }
  0xf8   :  { %2655 = vmatprep.subr.mxu1 %v2914_v0 }
  0xf9   :  { %1996 = vperm.xlu1 %2739, %v1841_v31   ;;  %2648 = vmatmul.mubr.msk.f32.vlgmr.msra.gmra.mrb[22].mxu1 %vm62_vm0, %v2917_v27 }
  0xfa   :  { %2653 = vmatmul.mubr.msk.f32.vlgmr.msra.gmra.mrb[24].mxu0 %vm62_vm0, %v2917_v27  ;;  %2656 = vmatpush3.xpose.msk.msra.mxu1 %vm62_vm0, %v2216_v32 }
  0xfb   :  { %2657 = vmatprep.mubr.msk.f32.mxu1 %vm2916_vm1, %v2914_v0 }
  0xfd   :  { %2371 = vperm.xlu1 %2739, %v2216_v32   ;;  %2658 = vmatmul.mubr.msk.f32.vlgmr.msra.gmra.mrb[24].mxu1 %vm62_vm0, %v2917_v27 }
 0x10f   :  { %v141_v33 = vpop.f32.mrb[0].mxu0 }
 0x110   :  { %v143_v34 = vpop.f32.mrb[1].mxu0  ;;  %v211_v35 = vpop.f32.mrb[0].mxu1 }
 0x111   :  { %v212_v36 = vadd.f32 %v211_v35, %v141_v33  ;;  %v213_v37 = vpop.f32.mrb[1].mxu1 }
 0x113   :  { %v281_v38 = vpop.f32.mrb[2].mxu0 }
 0x114   :  { %v282_v39 = vadd.f32 %v281_v38, %v212_v36  ;;  %v283_v40 = vpop.f32.mrb[3].mxu0 }
 0x115   :  { %v351_v42 = vpop.f32.mrb[2].mxu1 }
 0x116   :  { %v352_v43 = vadd.f32 %v351_v42, %v282_v39  ;;  %v353_v44 = vpop.f32.mrb[3].mxu1 }
 0x117   :  { %v454_v45 = vpop.f32.mrb[4].mxu0 }
 0x118   :  { %v355_v46 = vadd.f32 %v352_v43, %v74_v41  ;;  %v456_v47 = vpop.f32.mrb[5].mxu0 }
 0x119   :  { %v524_v48 = vpop.f32.mrb[4].mxu1 }
 0x11a   :  { %357 = vst.msk [vmem:[#allocation2] sm:$0xff] %vm56_vm2, %v355_v46  ;;  %v525_v49 = vadd.f32 %v524_v48, %v454_v45  ;;  %v526_v50 = vpop.f32.mrb[5].mxu1 }
 0x11b   :  { %v594_v51 = vpop.f32.mrb[6].mxu0 }
 0x11c   :  { %v595_v52 = vadd.f32 %v594_v51, %v525_v49  ;;  %v596_v53 = vpop.f32.mrb[7].mxu0 }
 0x11d   :  { %v664_v55 = vpop.f32.mrb[6].mxu1 }
 0x11e   :  { %v665_v56 = vadd.f32 %v664_v55, %v595_v52  ;;  %v666_v57 = vpop.f32.mrb[7].mxu1 }
 0x11f   :  { %v737_v58 = vpop.f32.mrb[8].mxu0 }
 0x120   :  { %v668_v59 = vadd.f32 %v665_v56, %v387_v54  ;;  %v739_v60 = vpop.f32.mrb[9].mxu0 }
 0x121   :  { %v1575_v36 = vld [vmem:[#allocation2] sm:$0xff] }
 0x122   :  { %v807_v61 = vpop.f32.mrb[8].mxu1  ;;  %669 = vst.msk [vmem:[#allocation3] sm:$0xff] %vm56_vm2, %v668_v59 }
 0x123   :  { %v808_v62 = vadd.f32 %v807_v61, %v737_v58  ;;  %v809_v63 = vpop.f32.mrb[9].mxu1 }
 0x124   :  { %v877_v5 = vpop.f32.mrb[10].mxu0 }
 0x125   :  { %v878_v6 = vadd.f32 %v877_v5, %v808_v62  ;;  %v879_v7 = vpop.f32.mrb[11].mxu0 }
 0x126   :  { %v947_v12 = vpop.f32.mrb[10].mxu1 }
 0x127   :  { %v948_v16 = vadd.f32 %v947_v12, %v878_v6  ;;  %v949_v1 = vpop.f32.mrb[11].mxu1 }
 0x128   :  { %v1048_v2 = vpop.f32.mrb[12].mxu0 }
 0x129   :  { %v951_v3 = vadd.f32 %v948_v16, %v670_v11  ;;  %v1050_v4 = vpop.f32.mrb[13].mxu0  ;;  %v1842_v44 = vld [vmem:[#allocation3] sm:$0xff] }
 0x12a   :  { %v1118_v8 = vpop.f32.mrb[12].mxu1 }
 0x12b   :  { %952 = vst.msk [vmem:[#allocation5] sm:$0xff] %vm56_vm2, %v951_v3  ;;  %v1119_v9 = vadd.f32 %v1118_v8, %v1048_v2  ;;  %v1120_v10 = vpop.f32.mrb[13].mxu1 }
 0x12c   :  { %v1188_v13 = vpop.f32.mrb[14].mxu0 }
 0x12d   :  { %v1189_v14 = vadd.f32 %v1188_v13, %v1119_v9  ;;  %v1190_v15 = vpop.f32.mrb[15].mxu0 }
 0x12e   :  { %v1258_v18 = vpop.f32.mrb[14].mxu1 }
 0x12f   :  { %v1259_v19 = vadd.f32 %v1258_v18, %v1189_v14  ;;  %v1260_v20 = vpop.f32.mrb[15].mxu1 }
 0x130   :  { %v1331_v21 = vpop.f32.mrb[16].mxu0 }
 0x131   :  { %v1262_v22 = vadd.f32 %v1259_v19, %v981_v17  ;;  %v1333_v23 = vpop.f32.mrb[17].mxu0 }
 0x132   :  { %v1401_v24 = vpop.f32.mrb[16].mxu1  ;;  %v2101_v42 = vld [vmem:[#allocation5] sm:$0xff] }
 0x133   :  { %1263 = vst.msk [vmem:[#allocation4] sm:$0xff] %vm56_vm2, %v1262_v22  ;;  %v1402_v25 = vadd.f32 %v1401_v24, %v1331_v21  ;;  %v1403_v26 = vpop.f32.mrb[17].mxu1 }
 0x134   :  { %v1471_v27 = vpop.f32.mrb[18].mxu0 }
 0x135   :  { %v1472_v28 = vadd.f32 %v1471_v27, %v1402_v25  ;;  %v1473_v29 = vpop.f32.mrb[19].mxu0 }
 0x136   :  { %v1541_v31 = vpop.f32.mrb[18].mxu1 }
 0x137   :  { %v1542_v32 = vadd.f32 %v1541_v31, %v1472_v28  ;;  %v1543_v33 = vpop.f32.mrb[19].mxu1 }
 0x139   :  { %v1545_v34 = vadd.f32 %v1542_v32, %v1264_v30 }
 0x13a   :  { %v2217_v53 = vld [vmem:[#allocation4] sm:$0xff] }
 0x13b   :  { %1546 = vst.msk [vmem:[#allocation6] sm:$0xff] %vm56_vm2, %v1545_v34 }
 0x142   :  { %v2476_v52 = vld [vmem:[#allocation6] sm:$0xff] }
 0x16c   :  { %v1579_v35 = vpop.permute.xlu1 %1578 }
 0x16d   :  { %v1581_v38 = vmul.f32 %v1579_v35, %v1575_v36  ;;  %v2102_v47 = vmul.f32 %v2101_v42, %v1579_v35  ;;  %v2477_v59 = vmul.f32 %v2476_v52, %v1579_v35 }
 0x170   :  { %v2221_v37 = vpop.permute.xlu1 %2220 }
 0x171   :  { %v2223_v60 = vmul.f32 %v2221_v37, %v2217_v53 }
 0x172   :  { %v1846_v43 = vpop.permute.xlu0 %1845 }
 0x173   :  { %v1848_v48 = vmul.f32 %v1846_v43, %v1842_v44 }
 0x174   :  { %v1733_v45 = vpop.permute.xlu1 %1732 }
 0x178   :  { %v1997_v61 = vpop.permute.xlu1 %1996 }
 0x17c   :  { %v2372_v17 = vpop.permute.xlu1 %2371 }
 0x1c3   :  { %v1653_v39 = vpop.f32.mrb[20].mxu0 }
 0x1c4   :  { %v1657_v40 = vmul.f32 %v1653_v39, %v1581_v38  ;;  %v2634_v41 = vpop.f32.mrb[21].mxu0 }
 0x1c6   :  { %v1736_v49 = vmul.f32 2.0, %v1657_v40 }
 0x1c7   :  { %v1727_v46 = vpop.f32.mrb[20].mxu1 }
 0x1c8   :  { %v1735_v50 = vadd.f32 %v1733_v45, %v1727_v46  ;;  %v2639_v51 = vpop.f32.mrb[21].mxu1 }
 0x1c9   :  { %v1917_v54 = vpop.f32.mrb[22].mxu0 }
 0x1ca   :  { %v1737_v55 = vsub.f32 %v1735_v50, %v1736_v49  ;;  %v1921_v56 = vmul.f32 %v1917_v54, %v1848_v48  ;;  %v2103_v57 = vmul.f32 %v2102_v47, %v1917_v54  ;;  %v2644_v58 = vpop.f32.mrb[23].mxu0 }
 0x1cc   :  { %v1738_v62 = vmax.f32 %v1737_v55, 1e-12  ;;  %v2000_v63 = vmul.f32 2.0, %v1921_v56  ;;  %v2105_v5 = vmul.f32 2.0, %v2103_v57  ;;  %v1991_v6 = vpop.f32.mrb[22].mxu1 }
 0x1cd   :  { %v2292_v7 = vpop.f32.mrb[24].mxu0  ;;  %v1999_v11 = vadd.f32 %v1997_v61, %v1991_v6  ;;  %v2104_v12 = vadd.f32 %v1991_v6, %v1733_v45  ;;  %v2649_v2 = vpop.f32.mrb[23].mxu1 }
 0x1ce   :  { %v2296_v16 = vmul.f32 %v2292_v7, %v2223_v60  ;;  %v2478_v1 = vmul.f32 %v2477_v59, %v2292_v7  ;;  %v2654_v3 = vpop.f32.mrb[25].mxu0  ;;  %v1753_v4 = vmul.f32 -5000.0, %v1738_v62  ;;  %v1739_v8 = vmul.f32 -500000.0, %v1738_v62 }
 0x1cf   :  { %v1809_v9 = vmul.f32 -0.5, %v1738_v62  ;;  %v1767_v10 = vmul.f32 -200.0, %v1738_v62  ;;  %v2001_v13 = vsub.f32 %v1999_v11, %v2000_v63  ;;  %v2106_v14 = vsub.f32 %v2104_v12, %v2105_v5 }
 0x1d0   :  { %v3185_v15 = vmul.f32 2.0, %v2296_v16  ;;  %v3187_v18 = vmul.f32 2.0, %v2478_v1  ;;  %v2366_v19 = vpop.f32.mrb[24].mxu1  ;;  %v1754_v20 = vmul.f32 1.442695, %v1753_v4  ;;  %v1781_v25 = vmul.f32 -50.0, %v1738_v62 }
 0x1d1   :  { %v1740_v21 = vmul.f32 1.442695, %v1739_v8  ;;  %v2002_v22 = vmax.f32 %v2001_v13, 1e-12  ;;  %v2374_v23 = vadd.f32 %v2372_v17, %v2366_v19  ;;  %v3189_v24 = vadd.f32 %v2366_v19, %v1733_v45  ;;  %v2659_v26 = vpop.f32.mrb[25].mxu1 }
 0x1d2   :  { %2747 = vpow2.f32 %v1754_v20  ;;  %v1810_v27 = vmul.f32 1.442695, %v1809_v9  ;;  %v1768_v28 = vmul.f32 1.442695, %v1767_v10  ;;  %v1782_v34 = vmul.f32 1.442695, %v1781_v25 }
 0x1d3   :  { %v2376_v29 = vsub.f32 %v2374_v23, %v3185_v15  ;;  %v2481_v30 = vsub.f32 %v3189_v24, %v3187_v18  ;;  %2749 = vpow2.f32 %v1740_v21  ;;  %v2003_v31 = vmul.f32 -500000.0, %v2002_v22 }
 0x1d4   :  { %2751 = vpow2.f32 %v1810_v27  ;;  %v2031_v32 = vmul.f32 -200.0, %v2002_v22  ;;  %v1795_v35 = vmul.f32 -12.5, %v1738_v62  ;;  %v2059_v37 = vmul.f32 -12.5, %v2002_v22 }
 0x1d5   :  { %2753 = vpow2.f32 %v1768_v28  ;;  %v2004_v33 = vmul.f32 1.442695, %v2003_v31  ;;  %v1823_v39 = vmul.f32 -0.125, %v1738_v62  ;;  %v3194_v41 = vmax.f32 %v2106_v14, 1e-12 }
 0x1d6   :  { %v2032_v36 = vmul.f32 1.442695, %v2031_v32  ;;  %v1796_v38 = vmul.f32 1.442695, %v1795_v35  ;;  %v2060_v42 = vmul.f32 1.442695, %v2059_v37 }
 0x1d7   :  { %2755 = vpow2.f32 %v2004_v33  ;;  %v2087_v43 = vmul.f32 -0.125, %v2002_v22  ;;  %v1824_v46 = vmul.f32 1.442695, %v1823_v39  ;;  %v2017_v47 = vmul.f32 -5000.0, %v2002_v22 }
 0x1d8   :  { %2757 = vpow2.f32 %v1782_v34  ;;  %v2122_v52 = vmul.f32 -5000.0, %v3194_v41  ;;  %v2045_v55 = vmul.f32 -50.0, %v2002_v22  ;;  %v2150_v60 = vmul.f32 -50.0, %v3194_v41 }
 0x1d9   :  { %2759 = vpow2.f32 %v2032_v36  ;;  %v2088_v51 = vmul.f32 1.442695, %v2087_v43  ;;  %v2018_v54 = vmul.f32 1.442695, %v2017_v47  ;;  %v2073_v63 = vmul.f32 -0.5, %v2002_v22 }
 0x1da   :  { %2761 = vpow2.f32 %v1796_v38  ;;  %v2123_v59 = vmul.f32 1.442695, %v2122_v52  ;;  %v2046_v62 = vmul.f32 1.442695, %v2045_v55  ;;  %v3204_v11 = vmax.f32 %v2376_v29, 1e-12 }
 0x1db   :  { %2763 = vpow2.f32 %v2060_v42  ;;  %v2151_v12 = vmul.f32 1.442695, %v2150_v60  ;;  %v2178_v16 = vmul.f32 -0.5, %v3194_v41  ;;  %v2074_v2 = vmul.f32 1.442695, %v2073_v63 }
 0x1dc   :  { %v2748_v40 = vpop.eup %2747  ;;  %2765 = vpow2.f32 %v1824_v46  ;;  %v2108_v3 = vmul.f32 -500000.0, %v3194_v41  ;;  %v2378_v13 = vmul.f32 -500000.0, %v3204_v11  ;;  %v2136_v17 = vmul.f32 -200.0, %v3194_v41 }
 0x1dd   :  { %v2750_v44 = vpop.eup %2749  ;;  %v1756_v45 = vsel %vm56_vm2, %v2748_v40, 0.0  ;;  %2767 = vpow2.f32 %v2088_v51  ;;  %v2179_v10 = vmul.f32 1.442695, %v2178_v16  ;;  %v2406_v23 = vmul.f32 -200.0, %v3204_v11 }
 0x1de   :  { %v2752_v48 = vpop.eup %2751  ;;  %1757 = vadd.xlane.f32.xlu0 %v1756_v45  ;;  %v1742_v49 = vsel %vm56_vm2, %v2750_v44, 0.0  ;;  %2769 = vpow2.f32 %v2018_v54  ;;  %v2109_v15 = vmul.f32 1.442695, %v2108_v3  ;;  %v2379_v22 = vmul.f32 1.442695, %v2378_v13 }
 0x1df   :  { %v2754_v50 = vpop.eup %2753  ;;  %1743 = vadd.xlane.f32.xlu1 %v1742_v49  ;;  %v1812_v53 = vsel %vm56_vm2, %v2752_v48, 0.0  ;;  %2771 = vpow2.f32 %v2123_v59  ;;  %v2137_v26 = vmul.f32 1.442695, %v2136_v17  ;;  %v2164_v27 = vmul.f32 -12.5, %v3194_v41 }
 0x1e0   :  { %v1770_v57 = vsel %vm56_vm2, %v2754_v50, 0.0  ;;  %2773 = vpow2.f32 %v2046_v62  ;;  %v2407_v32 = vmul.f32 1.442695, %v2406_v23  ;;  %v2434_v33 = vmul.f32 -12.5, %v3204_v11 }
 0x1e1   :  { %v2756_v56 = vpop.eup %2755  ;;  %2775 = vpow2.f32 %v2151_v12  ;;  %v2165_v35 = vmul.f32 1.442695, %v2164_v27  ;;  %v2192_v36 = vmul.f32 -0.125, %v3194_v41  ;;  %v3225_v40 = vmax.f32 %v2481_v30, 1e-12 }
 0x1e2   :  { %1813 = vadd.xlane.f32.xlu0 %v1812_v53  ;;  %v2758_v58 = vpop.eup %2757  ;;  %v2006_v61 = vsel %vm56_vm2, %v2756_v56, 0.0  ;;  %2777 = vpow2.f32 %v2074_v2  ;;  %v2435_v42 = vmul.f32 1.442695, %v2434_v33  ;;  %v2462_v43 = vmul.f32 -0.125, %v3204_v11 }
 0x1e3   :  { %1771 = vadd.xlane.f32.xlu1 %v1770_v57  ;;  %v2760_v5 = vpop.eup %2759  ;;  %v1784_v6 = vsel %vm56_vm2, %v2758_v58, 0.0  ;;  %2779 = vpow2.f32 %v2179_v10  ;;  %v2193_v45 = vmul.f32 1.442695, %v2192_v36  ;;  %v2392_v41 = vmul.f32 -5000.0, %v3204_v11 }
 0x1e4   :  { %v2762_v7 = vpop.eup %2761  ;;  %v2034_v1 = vsel %vm56_vm2, %v2760_v5, 0.0  ;;  %2781 = vpow2.f32 %v2109_v15  ;;  %v2463_v18 = vmul.f32 1.442695, %v2462_v43  ;;  %v2497_v24 = vmul.f32 -5000.0, %v3225_v40 }
 0x1e5   :  { %v2764_v4 = vpop.eup %2763  ;;  %v1798_v8 = vsel %vm56_vm2, %v2762_v7, 0.0  ;;  %2783 = vpow2.f32 %v2379_v22  ;;  %v2393_v49 = vmul.f32 1.442695, %v2392_v41  ;;  %v2420_v50 = vmul.f32 -50.0, %v3204_v11 }
 0x1e6   :  { %2007 = vadd.xlane.f32.xlu0 %v2006_v61  ;;  %v2766_v9 = vpop.eup %2765  ;;  %v2062_v14 = vsel %vm56_vm2, %v2764_v4, 0.0  ;;  %2785 = vpow2.f32 %v2137_v26  ;;  %v2498_v54 = vmul.f32 1.442695, %v2497_v24  ;;  %v2525_v55 = vmul.f32 -50.0, %v3225_v40 }
 0x1e7   :  { %1785 = vadd.xlane.f32.xlu1 %v1784_v6  ;;  %v2768_v19 = vpop.eup %2767  ;;  %v1826_v20 = vsel %vm56_vm2, %v2766_v9, 0.0  ;;  %2787 = vpow2.f32 %v2407_v32  ;;  %v2421_v57 = vmul.f32 1.442695, %v2420_v50  ;;  %v2448_v58 = vmul.f32 -0.5, %v3204_v11 }
 0x1e8   :  { %v2770_v21 = vpop.eup %2769  ;;  %v2090_v25 = vsel %vm56_vm2, %v2768_v19, 0.0  ;;  %2789 = vpow2.f32 %v2165_v35  ;;  %v2526_v62 = vmul.f32 1.442695, %v2525_v55  ;;  %v2553_v63 = vmul.f32 -0.5, %v3225_v40 }
 0x1e9   :  { %v2772_v28 = vpop.eup %2771  ;;  %v2020_v29 = vsel %vm56_vm2, %v2770_v21, 0.0  ;;  %2791 = vpow2.f32 %v2435_v42  ;;  %v2449_v6 = vmul.f32 1.442695, %v2448_v58  ;;  %v2483_v7 = vmul.f32 -500000.0, %v3225_v40 }
 0x1ea   :  { %2035 = vadd.xlane.f32.xlu0 %v2034_v1  ;;  %v2774_v31 = vpop.eup %2773  ;;  %v2125_v34 = vsel %vm56_vm2, %v2772_v28, 0.0  ;;  %2793 = vpow2.f32 %v2193_v45  ;;  %v2554_v1 = vmul.f32 1.442695, %v2553_v63  ;;  %v2511_v4 = vmul.f32 -200.0, %v3225_v40 }
 0x1eb   :  { %1799 = vadd.xlane.f32.xlu1 %v1798_v8  ;;  %v2776_v37 = vpop.eup %2775  ;;  %v2048_v38 = vsel %vm56_vm2, %v2774_v31, 0.0  ;;  %2795 = vpow2.f32 %v2463_v18  ;;  %v2484_v3 = vmul.f32 1.442695, %v2483_v7  ;;  %v2539_v15 = vmul.f32 -12.5, %v3225_v40 }
 0x1ec   :  { %v2778_v39 = vpop.eup %2777  ;;  %v2153_v44 = vsel %vm56_vm2, %v2776_v37, 0.0  ;;  %2797 = vpow2.f32 %v2393_v49  ;;  %v2567_v23 = vmul.f32 -0.125, %v3225_v40 }
 0x1ed   :  { %v2780_v46 = vpop.eup %2779  ;;  %v2076_v47 = vsel %vm56_vm2, %v2778_v39, 0.0  ;;  %2799 = vpow2.f32 %v2498_v54  ;;  %v2540_v22 = vmul.f32 1.442695, %v2539_v15 }
 0x1ee   :  { %2063 = vadd.xlane.f32.xlu0 %v2062_v14  ;;  %v2782_v48 = vpop.eup %2781  ;;  %v2181_v30 = vsel %vm56_vm2, %v2780_v46, 0.0  ;;  %2801 = vpow2.f32 %v2421_v57  ;;  %v2512_v14 = vmul.f32 1.442695, %v2511_v4 }
 0x1ef   :  { %1827 = vadd.xlane.f32.xlu1 %v1826_v20  ;;  %v2784_v51 = vpop.eup %2783  ;;  %v2111_v52 = vsel %vm56_vm2, %v2782_v48, 0.0  ;;  %2803 = vpow2.f32 %v2526_v62 }
 0x1f0   :  { %v2786_v53 = vpop.eup %2785  ;;  %v2381_v56 = vsel %vm56_vm2, %v2784_v51, 0.0  ;;  %2805 = vpow2.f32 %v2449_v6 }
 0x1f1   :  { %v2788_v59 = vpop.eup %2787  ;;  %v2139_v60 = vsel %vm56_vm2, %v2786_v53, 0.0  ;;  %2807 = vpow2.f32 %v2554_v1 }
 0x1f2   :  { %2091 = vadd.xlane.f32.xlu0 %v2090_v25  ;;  %v2790_v61 = vpop.eup %2789  ;;  %v2409_v5 = vsel %vm56_vm2, %v2788_v59, 0.0  ;;  %2809 = vpow2.f32 %v2484_v3 }
 0x1f3   :  { %2021 = vadd.xlane.f32.xlu1 %v2020_v29  ;;  %v2792_v12 = vpop.eup %2791  ;;  %v2167_v11 = vsel %vm56_vm2, %v2790_v61, 0.0  ;;  %2811 = vpow2.f32 %v2512_v14  ;;  %v2568_v29 = vmul.f32 1.442695, %v2567_v23 }
 0x1f4   :  { %v2794_v16 = vpop.eup %2793  ;;  %v2437_v2 = vsel %vm56_vm2, %v2792_v12, 0.0  ;;  %2813 = vpow2.f32 %v2540_v22 }
 0x1f5   :  { %v2796_v8 = vpop.eup %2795  ;;  %v2195_v9 = vsel %vm56_vm2, %v2794_v16, 0.0  ;;  %2815 = vpow2.f32 %v2568_v29 }
 0x1f6   :  { %2126 = vadd.xlane.f32.xlu0 %v2125_v34  ;;  %v2798_v10 = vpop.eup %2797  ;;  %v2465_v13 = vsel %vm56_vm2, %v2796_v8, 0.0 }
 0x1f7   :  { %2049 = vadd.xlane.f32.xlu1 %v2048_v38  ;;  %v2800_v17 = vpop.eup %2799  ;;  %v2395_v19 = vsel %vm56_vm2, %v2798_v10, 0.0 }
 0x1f8   :  { %v2802_v20 = vpop.eup %2801  ;;  %v2500_v21 = vsel %vm56_vm2, %v2800_v17, 0.0 }
 0x1f9   :  { %v2804_v25 = vpop.eup %2803  ;;  %v2423_v26 = vsel %vm56_vm2, %v2802_v20, 0.0 }
 0x1fa   :  { %2154 = vadd.xlane.f32.xlu0 %v2153_v44  ;;  %v2806_v27 = vpop.eup %2805  ;;  %v2528_v28 = vsel %vm56_vm2, %v2804_v25, 0.0 }
 0x1fb   :  { %2077 = vadd.xlane.f32.xlu1 %v2076_v47  ;;  %v2808_v31 = vpop.eup %2807  ;;  %v2451_v32 = vsel %vm56_vm2, %v2806_v27, 0.0 }
 0x1fc   :  { %v2810_v33 = vpop.eup %2809  ;;  %v2556_v34 = vsel %vm56_vm2, %v2808_v31, 0.0 }
 0x1fd   :  { %v2486_v35 = vsel %vm56_vm2, %v2810_v33, 0.0  ;;  %v2812_v36 = vpop.eup %2811 }
 0x1fe   :  { %2182 = vadd.xlane.f32.xlu0 %v2181_v30  ;;  %v2514_v37 = vsel %vm56_vm2, %v2812_v36, 0.0  ;;  %v2814_v38 = vpop.eup %2813 }
 0x1ff   :  { %2112 = vadd.xlane.f32.xlu1 %v2111_v52  ;;  %v2542_v39 = vsel %vm56_vm2, %v2814_v38, 0.0  ;;  %v2816_v40 = vpop.eup %2815 }
 0x200   :  { %v2570_v42 = vsel %vm56_vm2, %v2816_v40, 0.0 }
 0x202   :  { %2382 = vadd.xlane.f32.xlu0 %v2381_v56 }
 0x203   :  { %2140 = vadd.xlane.f32.xlu1 %v2139_v60 }
 0x206   :  { %2410 = vadd.xlane.f32.xlu0 %v2409_v5 }
 0x207   :  { %2168 = vadd.xlane.f32.xlu1 %v2167_v11 }
 0x20a   :  { %2438 = vadd.xlane.f32.xlu0 %v2437_v2 }
 0x20b   :  { %2196 = vadd.xlane.f32.xlu1 %v2195_v9 }
 0x20e   :  { %2466 = vadd.xlane.f32.xlu0 %v2465_v13 }
 0x20f   :  { %2396 = vadd.xlane.f32.xlu1 %v2395_v19 }
 0x212   :  { %2501 = vadd.xlane.f32.xlu0 %v2500_v21 }
 0x213   :  { %2424 = vadd.xlane.f32.xlu1 %v2423_v26 }
 0x216   :  { %2529 = vadd.xlane.f32.xlu0 %v2528_v28 }
 0x217   :  { %2452 = vadd.xlane.f32.xlu1 %v2451_v32 }
 0x21a   :  { %2557 = vadd.xlane.f32.xlu0 %v2556_v34 }
 0x21b   :  { %2487 = vadd.xlane.f32.xlu1 %v2486_v35 }
 0x21f   :  { %2515 = vadd.xlane.f32.xlu1 %v2514_v37 }
 0x223   :  { %2543 = vadd.xlane.f32.xlu1 %v2542_v39 }
 0x227   :  { %2571 = vadd.xlane.f32.xlu1 %v2570_v42 }
 0x26b   :  { %v1758_v43 = vpop.xlane.xlu0 %1757 }
 0x26c   :  { %v1759_v44 = vrot.slane %v1758_v43, 4  ;;  %v1744_v45 = vpop.xlane.xlu1 %1743 }
 0x26d   :  { %v1745_v41 = vrot.slane %v1744_v45, 4 }
 0x26e   :  { %v1760_v46 = vadd.f32 %v1759_v44, %v1758_v43 }
 0x26f   :  { %v1746_v47 = vadd.f32 %v1745_v41, %v1744_v45  ;;  %v1814_v48 = vpop.xlane.xlu0 %1813 }
 0x270   :  { %v1761_v18 = vrot.slane %v1760_v46, 2  ;;  %v1815_v24 = vrot.slane %v1814_v48, 4  ;;  %v1772_v30 = vpop.xlane.xlu1 %1771 }
 0x271   :  { %v1747_v49 = vrot.slane %v1746_v47, 2  ;;  %v1773_v50 = vrot.slane %v1772_v30, 4 }
 0x272   :  { %v1762_v51 = vadd.f32 %v1761_v18, %v1760_v46  ;;  %v1816_v52 = vadd.f32 %v1815_v24, %v1814_v48 }
 0x273   :  { %v1774_v53 = vadd.f32 %v1773_v50, %v1772_v30  ;;  %v2008_v54 = vpop.xlane.xlu0 %2007  ;;  %v1748_v55 = vadd.f32 %v1747_v49, %v1746_v47 }
 0x274   :  { %v2009_v56 = vrot.slane %v2008_v54, 4  ;;  %v1786_v57 = vpop.xlane.xlu1 %1785  ;;  %v1763_v58 = vrot.slane %v1762_v51, 1  ;;  %v1817_v63 = vrot.slane %v1816_v52, 2 }
 0x275   :  { %v1775_v59 = vrot.slane %v1774_v53, 2  ;;  %v1787_v60 = vrot.slane %v1786_v57, 4  ;;  %v1749_v61 = vrot.slane %v1748_v55, 1 }
 0x276   :  { %v1764_v62 = vadd.f32 %v1763_v58, %v1762_v51  ;;  %v2010_v11 = vadd.f32 %v2009_v56, %v2008_v54  ;;  %v1818_v14 = vadd.f32 %v1817_v63, %v1816_v52 }
 0x277   :  { %v1788_v5 = vadd.f32 %v1787_v60, %v1786_v57  ;;  %v2036_v6 = vpop.xlane.xlu0 %2035  ;;  %v1750_v7 = vadd.f32 %v1749_v61, %v1748_v55  ;;  %v1776_v12 = vadd.f32 %v1775_v59, %v1774_v53 }
 0x278   :  { %v2037_v16 = vrot.slane %v2036_v6, 4  ;;  %v1800_v1 = vpop.xlane.xlu1 %1799  ;;  %v2011_v15 = vrot.slane %v2010_v11, 2  ;;  %v1819_v29 = vrot.slane %v1818_v14, 1 }
 0x279   :  { %v1789_v2 = vrot.slane %v1788_v5, 2  ;;  %v1801_v3 = vrot.slane %v1800_v1, 4  ;;  %2660 = vpush %v1750_v7  ;;  %v1777_v4 = vrot.slane %v1776_v12, 1 }
 0x27a   :  { %2662 = vpush %v1764_v62  ;;  %v2038_v17 = vadd.f32 %v2037_v16, %v2036_v6  ;;  %v2012_v35 = vadd.f32 %v2011_v15, %v2010_v11  ;;  %v1820_v43 = vadd.f32 %v1819_v29, %v1818_v14 }
 0x27b   :  { %v1802_v8 = vadd.f32 %v1801_v3, %v1800_v1  ;;  %v2064_v9 = vpop.xlane.xlu0 %2063  ;;  %v1778_v10 = vadd.f32 %v1777_v4, %v1776_v12  ;;  %v1790_v13 = vadd.f32 %v1789_v2, %v1788_v5 }
 0x27c   :  { %v2065_v19 = vrot.slane %v2064_v9, 4  ;;  %v1828_v20 = vpop.xlane.xlu1 %1827  ;;  %v2039_v31 = vrot.slane %v2038_v17, 2  ;;  %v2013_v47 = vrot.slane %v2012_v35, 1 }
 0x27d   :  { %v1803_v21 = vrot.slane %v1802_v8, 2  ;;  %v1829_v22 = vrot.slane %v1828_v20, 4  ;;  %2664 = vpush %v1778_v10  ;;  %v1791_v23 = vrot.slane %v1790_v13, 1 }
 0x27e   :  { %v2066_v32 = vadd.f32 %v2065_v19, %v2064_v9  ;;  %v2040_v48 = vadd.f32 %v2039_v31, %v2038_v17  ;;  %v2014_v57 = vadd.f32 %v2013_v47, %v2012_v35 }
 0x27f   :  { %v1830_v25 = vadd.f32 %v1829_v22, %v1828_v20  ;;  %v2092_v26 = vpop.xlane.xlu0 %2091  ;;  %v1792_v27 = vadd.f32 %v1791_v23, %v1790_v13  ;;  %v1804_v28 = vadd.f32 %v1803_v21, %v1802_v8 }
 0x280   :  { %v2093_v33 = vrot.slane %v2092_v26, 4  ;;  %v2022_v34 = vpop.xlane.xlu1 %2021  ;;  %v2067_v45 = vrot.slane %v2066_v32, 2  ;;  %v2041_v58 = vrot.slane %v2040_v48, 1 }
 0x281   :  { %v1831_v36 = vrot.slane %v1830_v25, 2  ;;  %v2023_v0 = vrot.slane %v2022_v34, 4  ;;  %2666 = vpush %v1792_v27  ;;  %v1805_v37 = vrot.slane %v1804_v28, 1 }
 0x282   :  { %v2094_v38 = vadd.f32 %v2093_v33, %v2092_v26  ;;  %v2068_v59 = vadd.f32 %v2067_v45, %v2066_v32  ;;  %v2042_v3 = vadd.f32 %v2041_v58, %v2040_v48 }
 0x283   :  { %v2024_v39 = vadd.f32 %v2023_v0, %v2022_v34  ;;  %v2127_v40 = vpop.xlane.xlu0 %2126  ;;  %v1806_v42 = vadd.f32 %v1805_v37, %v1804_v28  ;;  %v1832_v44 = vadd.f32 %v1831_v36, %v1830_v25 }
 0x284   :  { %v2128_v41 = vrot.slane %v2127_v40, 4  ;;  %v2050_v46 = vpop.xlane.xlu1 %2049  ;;  %v2095_v49 = vrot.slane %v2094_v38, 2  ;;  %v2069_v4 = vrot.slane %v2068_v59, 1 }
 0x285   :  { %v2025_v18 = vrot.slane %v2024_v39, 2  ;;  %v2051_v24 = vrot.slane %v2050_v46, 4  ;;  %2668 = vpush %v1806_v42  ;;  %v1833_v30 = vrot.slane %v1832_v44, 1 }
 0x286   :  { %2670 = vpush %v1820_v43  ;;  %v2129_v50 = vadd.f32 %v2128_v41, %v2127_v40  ;;  %v2096_v63 = vadd.f32 %v2095_v49, %v2094_v38  ;;  %v2070_v26 = vadd.f32 %v2069_v4, %v2068_v59 }
 0x287   :  { %v2052_v51 = vadd.f32 %v2051_v24, %v2050_v46  ;;  %v2155_v52 = vpop.xlane.xlu0 %2154  ;;  %v1834_v53 = vadd.f32 %v1833_v30, %v1832_v44  ;;  %v2026_v54 = vadd.f32 %v2025_v18, %v2024_v39 }
 0x288   :  { %v2156_v55 = vrot.slane %v2155_v52, 4  ;;  %v2078_v56 = vpop.xlane.xlu1 %2077  ;;  %v2130_v5 = vrot.slane %v2129_v50, 2  ;;  %v2097_v13 = vrot.slane %v2096_v63, 1 }
 0x289   :  { %v2053_v60 = vrot.slane %v2052_v51, 2  ;;  %v2079_v61 = vrot.slane %v2078_v56, 4  ;;  %2672 = vpush %v1834_v53  ;;  %v2027_v62 = vrot.slane %v2026_v54, 1 }
 0x28a   :  { %2674 = vpush %v2014_v57  ;;  %v2157_v16 = vadd.f32 %v2156_v55, %v2155_v52  ;;  %v2131_v20 = vadd.f32 %v2130_v5, %v2129_v50  ;;  %v2098_v31 = vadd.f32 %v2097_v13, %v2096_v63 }
 0x28b   :  { %v2080_v6 = vadd.f32 %v2079_v61, %v2078_v56  ;;  %v2183_v7 = vpop.xlane.xlu0 %2182  ;;  %v2028_v12 = vadd.f32 %v2027_v62, %v2026_v54  ;;  %v2054_v11 = vadd.f32 %v2053_v60, %v2052_v51 }
 0x28c   :  { %v2184_v1 = vrot.slane %v2183_v7, 4  ;;  %v2113_v2 = vpop.xlane.xlu1 %2112  ;;  %v2158_v21 = vrot.slane %v2157_v16, 2  ;;  %v2132_v36 = vrot.slane %v2131_v20, 1 }
 0x28d   :  { %v2081_v8 = vrot.slane %v2080_v6, 2  ;;  %v2114_v9 = vrot.slane %v2113_v2, 4  ;;  %2676 = vpush %v2028_v12  ;;  %v2055_v10 = vrot.slane %v2054_v11, 1 }
 0x28e   :  { %2678 = vpush %v2042_v3  ;;  %v2185_v22 = vadd.f32 %v2184_v1, %v2183_v7  ;;  %v2159_v40 = vadd.f32 %v2158_v21, %v2157_v16  ;;  %v2133_v48 = vadd.f32 %v2132_v36, %v2131_v20 }
 0x28f   :  { %v2115_v14 = vadd.f32 %v2114_v9, %v2113_v2  ;;  %v2383_v15 = vpop.xlane.xlu0 %2382  ;;  %v2056_v17 = vadd.f32 %v2055_v10, %v2054_v11  ;;  %v2082_v19 = vadd.f32 %v2081_v8, %v2080_v6 }
 0x290   :  { %v2384_v23 = vrot.slane %v2383_v15, 4  ;;  %v2141_v25 = vpop.xlane.xlu1 %2140  ;;  %v2186_v0 = vrot.slane %v2185_v22, 2  ;;  %v2160_v50 = vrot.slane %v2159_v40, 1 }
 0x291   :  { %v2116_v27 = vrot.slane %v2115_v14, 2  ;;  %v2142_v28 = vrot.slane %v2141_v25, 4  ;;  %2680 = vpush %v2056_v17  ;;  %v2083_v29 = vrot.slane %v2082_v19, 1 }
 0x292   :  { %2682 = vpush %v2070_v26  ;;  %v2385_v37 = vadd.f32 %v2384_v23, %v2383_v15  ;;  %v2187_v51 = vadd.f32 %v2186_v0, %v2185_v22  ;;  %v2161_v63 = vadd.f32 %v2160_v50, %v2159_v40 }
 0x293   :  { %v2143_v32 = vadd.f32 %v2142_v28, %v2141_v25  ;;  %v2411_v33 = vpop.xlane.xlu0 %2410  ;;  %v2084_v34 = vadd.f32 %v2083_v29, %v2082_v19  ;;  %v2117_v35 = vadd.f32 %v2116_v27, %v2115_v14 }
 0x294   :  { %v2412_v38 = vrot.slane %v2411_v33, 4  ;;  %v2169_v39 = vpop.xlane.xlu1 %2168  ;;  %v2386_v24 = vrot.slane %v2385_v37, 2  ;;  %v2188_v5 = vrot.slane %v2187_v51, 1 }
 0x295   :  { %v2144_v42 = vrot.slane %v2143_v32, 2  ;;  %v2170_v43 = vrot.slane %v2169_v39, 4  ;;  %2684 = vpush %v2084_v34  ;;  %v2118_v44 = vrot.slane %v2117_v35, 1 }
 0x296   :  { %v2413_v45 = vadd.f32 %v2412_v38, %v2411_v33  ;;  %2686 = vpush %v2098_v31  ;;  %v2387_v6 = vadd.f32 %v2386_v24, %v2385_v37  ;;  %v2189_v14 = vadd.f32 %v2188_v5, %v2187_v51 }
 0x297   :  { %v2171_v41 = vadd.f32 %v2170_v43, %v2169_v39  ;;  %v2439_v46 = vpop.xlane.xlu0 %2438  ;;  %v2119_v47 = vadd.f32 %v2118_v44, %v2117_v35  ;;  %v2145_v18 = vadd.f32 %v2144_v42, %v2143_v32 }
 0x298   :  { %v2440_v30 = vrot.slane %v2439_v46, 4  ;;  %v2197_v49 = vpop.xlane.xlu1 %2196  ;;  %v2414_v55 = vrot.slane %v2413_v45, 2  ;;  %v2388_v15 = vrot.slane %v2387_v6, 1 }
 0x299   :  { %v2172_v52 = vrot.slane %v2171_v41, 2  ;;  %v2198_v53 = vrot.slane %v2197_v49, 4  ;;  %2688 = vpush %v2119_v47  ;;  %v2146_v54 = vrot.slane %v2145_v18, 1 }
 0x29a   :  { %2690 = vpush %v2133_v48  ;;  %v2441_v56 = vadd.f32 %v2440_v30, %v2439_v46  ;;  %v2415_v16 = vadd.f32 %v2414_v55, %v2413_v45  ;;  %v2389_v33 = vadd.f32 %v2388_v15, %v2387_v6 }
 0x29b   :  { %v2199_v57 = vadd.f32 %v2198_v53, %v2197_v49  ;;  %v2467_v58 = vpop.xlane.xlu0 %2466  ;;  %v2147_v59 = vadd.f32 %v2146_v54, %v2145_v18  ;;  %v2173_v60 = vadd.f32 %v2172_v52, %v2171_v41 }
 0x29c   :  { %v2468_v61 = vrot.slane %v2467_v58, 4  ;;  %v2397_v62 = vpop.xlane.xlu1 %2396  ;;  %v2442_v1 = vrot.slane %v2441_v56, 2  ;;  %v2416_v21 = vrot.slane %v2415_v16, 1 }
 0x29d   :  { %v2200_v7 = vrot.slane %v2199_v57, 2  ;;  %v2398_v12 = vrot.slane %v2397_v62, 4  ;;  %2692 = vpush %v2147_v59  ;;  %v2174_v11 = vrot.slane %v2173_v60, 1 }
 0x29e   :  { %2694 = vpush %v2161_v63  ;;  %v2469_v9 = vadd.f32 %v2468_v61, %v2467_v58  ;;  %v2443_v27 = vadd.f32 %v2442_v1, %v2441_v56  ;;  %v2417_v0 = vadd.f32 %v2416_v21, %v2415_v16 }
 0x29f   :  { %v2399_v2 = vadd.f32 %v2398_v12, %v2397_v62  ;;  %v2502_v3 = vpop.xlane.xlu0 %2501  ;;  %v2175_v4 = vadd.f32 %v2174_v11, %v2173_v60  ;;  %v2201_v8 = vadd.f32 %v2200_v7, %v2199_v57 }
 0x2a0   :  { %v2503_v10 = vrot.slane %v2502_v3, 4  ;;  %v2425_v13 = vpop.xlane.xlu1 %2424  ;;  %v2470_v28 = vrot.slane %v2469_v9, 2  ;;  %v2444_v42 = vrot.slane %v2443_v27, 1 }
 0x2a1   :  { %v2400_v17 = vrot.slane %v2399_v2, 2  ;;  %v2426_v19 = vrot.slane %v2425_v13, 4  ;;  %2696 = vpush %v2175_v4  ;;  %v2202_v20 = vrot.slane %v2201_v8, 1 }
 0x2a2   :  { %2698 = vpush %v2189_v14  ;;  %v2504_v29 = vadd.f32 %v2503_v10, %v2502_v3  ;;  %v2471_v46 = vadd.f32 %v2470_v28, %v2469_v9  ;;  %v2445_v49 = vadd.f32 %v2444_v42, %v2443_v27 }
 0x2a3   :  { %v2427_v22 = vadd.f32 %v2426_v19, %v2425_v13  ;;  %v2530_v23 = vpop.xlane.xlu0 %2529  ;;  %v2203_v25 = vadd.f32 %v2202_v20, %v2201_v8  ;;  %v2401_v26 = vadd.f32 %v2400_v17, %v2399_v2 }
 0x2a4   :  { %v2531_v31 = vrot.slane %v2530_v23, 4  ;;  %v2453_v32 = vpop.xlane.xlu1 %2452  ;;  %v2505_v43 = vrot.slane %v2504_v29, 2  ;;  %v2472_v54 = vrot.slane %v2471_v46, 1 }
 0x2a5   :  { %v2428_v34 = vrot.slane %v2427_v22, 2  ;;  %v2454_v35 = vrot.slane %v2453_v32, 4  ;;  %2700 = vpush %v2203_v25  ;;  %v2402_v36 = vrot.slane %v2401_v26, 1 }
 0x2a6   :  { %2702 = vpush %v2389_v33  ;;  %v2532_v44 = vadd.f32 %v2531_v31, %v2530_v23  ;;  %v2506_v55 = vadd.f32 %v2505_v43, %v2504_v29  ;;  %v2473_v5 = vadd.f32 %v2472_v54, %v2471_v46 }
 0x2a7   :  { %v2455_v37 = vadd.f32 %v2454_v35, %v2453_v32  ;;  %v2558_v38 = vpop.xlane.xlu0 %2557  ;;  %v2403_v39 = vadd.f32 %v2402_v36, %v2401_v26  ;;  %v2429_v40 = vadd.f32 %v2428_v34, %v2427_v22 }
 0x2a8   :  { %v2559_v45 = vrot.slane %v2558_v38, 4  ;;  %v2488_v41 = vpop.xlane.xlu1 %2487  ;;  %v2533_v51 = vrot.slane %v2532_v44, 2  ;;  %v2507_v6 = vrot.slane %v2506_v55, 1 }
 0x2a9   :  { %v2456_v47 = vrot.slane %v2455_v37, 2  ;;  %v2489_v48 = vrot.slane %v2488_v41, 4  ;;  %2704 = vpush %v2403_v39  ;;  %v2430_v18 = vrot.slane %v2429_v40, 1 }
 0x2aa   :  { %2706 = vpush %v2417_v0  ;;  %v2560_v52 = vadd.f32 %v2559_v45, %v2558_v38  ;;  %v2534_v7 = vadd.f32 %v2533_v51, %v2532_v44  ;;  %v2508_v9 = vadd.f32 %v2507_v6, %v2506_v55  ;;  %s3261_s2 = spop %2660 }
 0x2ab   :  { %v2490_v24 = vadd.f32 %v2489_v48, %v2488_v41  ;;  %v2431_v30 = vadd.f32 %v2430_v18, %v2429_v40  ;;  %v2457_v50 = vadd.f32 %v2456_v47, %v2455_v37  ;;  %s2663_s19 = spop %2662 }
 0x2ac   :  { %v2516_v53 = vpop.xlane.xlu1 %2515  ;;  %v2561_v62 = vrot.slane %v2560_v52, 2  ;;  %v2535_v10 = vrot.slane %v2534_v7, 1  ;;  %s1766_s8 = sadd.f32 %s2663_s19, %s3261_s2 }
 0x2ad   :  { %v2491_v56 = vrot.slane %v2490_v24, 2  ;;  %v2517_v57 = vrot.slane %v2516_v53, 4  ;;  %2708 = vpush %v2431_v30  ;;  %v2458_v58 = vrot.slane %v2457_v50, 1 }
 0x2ae   :  { %2710 = vpush %v2445_v49  ;;  %v2562_v4 = vadd.f32 %v2561_v62, %v2560_v52  ;;  %v2536_v21 = vadd.f32 %v2535_v10, %v2534_v7  ;;  %s2665_s20 = spop %2664 }
 0x2af   :  { %v2518_v59 = vadd.f32 %v2517_v57, %v2516_v53  ;;  %v2459_v60 = vadd.f32 %v2458_v58, %v2457_v50  ;;  %v2492_v61 = vadd.f32 %v2491_v56, %v2490_v24  ;;  %s1780_s11 = sadd.f32 %s2665_s20, %s1766_s8 }
 0x2b0   :  { %v2544_v63 = vpop.xlane.xlu1 %2543  ;;  %v2563_v22 = vrot.slane %v2562_v4, 1 }
 0x2b1   :  { %v2519_v12 = vrot.slane %v2518_v59, 2  ;;  %v2545_v11 = vrot.slane %v2544_v63, 4  ;;  %2712 = vpush %v2459_v60  ;;  %v2493_v16 = vrot.slane %v2492_v61, 1 }
 0x2b2   :  { %2714 = vpush %v2473_v5  ;;  %v2564_v28 = vadd.f32 %v2563_v22, %v2562_v4  ;;  %s3263_s21 = spop %2666 }
 0x2b3   :  { %v2546_v1 = vadd.f32 %v2545_v11, %v2544_v63  ;;  %v2494_v2 = vadd.f32 %v2493_v16, %v2492_v61  ;;  %v2520_v3 = vadd.f32 %v2519_v12, %v2518_v59  ;;  %s1794_s17 = sadd.f32 %s3263_s21, %s1780_s11 }
 0x2b4   :  { %v2572_v8 = vpop.xlane.xlu1 %2571 }
 0x2b5   :  { %v2547_v13 = vrot.slane %v2546_v1, 2  ;;  %v2573_v14 = vrot.slane %v2572_v8, 4  ;;  %2716 = vpush %v2494_v2  ;;  %v2521_v15 = vrot.slane %v2520_v3, 1 }
 0x2b6   :  { %2718 = vpush %v2508_v9  ;;  %s2669_s22 = spop %2668 }
 0x2b7   :  { %v2574_v17 = vadd.f32 %v2573_v14, %v2572_v8  ;;  %v2522_v19 = vadd.f32 %v2521_v15, %v2520_v3  ;;  %v2548_v20 = vadd.f32 %v2547_v13, %v2546_v1  ;;  %s3265_s23 = spop %2670  ;;  %s1808_s15 = sadd.f32 %s2669_s22, %s1794_s17 }
 0x2b9   :  { %v2575_v23 = vrot.slane %v2574_v17, 2  ;;  %2720 = vpush %v2522_v19  ;;  %v2549_v25 = vrot.slane %v2548_v20, 1 }
 0x2ba   :  { %2722 = vpush %v2536_v21  ;;  %s3267_s24 = spop %2672 }
 0x2bb   :  { %v2576_v26 = vadd.f32 %v2575_v23, %v2574_v17  ;;  %v2550_v27 = vadd.f32 %v2549_v25, %v2548_v20  ;;  %s2675_s25 = spop %2674 }
 0x2bd   :  { %2724 = vpush %v2550_v27  ;;  %v2577_v29 = vrot.slane %v2576_v26, 1 }
 0x2be   :  { %2726 = vpush %v2564_v28  ;;  %s2677_s26 = spop %2676 }
 0x2bf   :  { %v2578_v31 = vadd.f32 %v2577_v29, %v2576_v26  ;;  %s2679_s27 = spop %2678  ;;  %s2030_s7 = sadd.f32 %s2677_s26, %s2675_s25 }
 0x2c1   :  { %2728 = vpush %v2578_v31  ;;  %s2044_s12 = sadd.f32 %s2679_s27, %s2030_s7 }
 0x2c2   :  { %s2681_s28 = spop %2680 }
 0x2c3   :  { %s2683_s29 = spop %2682 }
 0x2c6   :  { %s3269_s30 = spop %2684 }
 0x2c7   :  { %s3271_s4 = spop %2686 }
 0x2c8   :  { %3301 = sst [smem:[#allocation20_spill]] %s3271_s4 }
 0x2c9   :  { %s2058_s4 = sadd.f32 %s2681_s28, %s2044_s12  ;;  %s3302_s19 = sld [smem:[#allocation20_spill]] }
 0x2ca   :  { %s2689_s5 = spop %2688 }
 0x2cb   :  { %s2691_s6 = spop %2690  ;;  %s2072_s7 = sadd.f32 %s2683_s29, %s2058_s4 }
 0x2cc   :  { %s2135_s14 = sadd.f32 %s2691_s6, %s2689_s5 }
 0x2cd   :  { %s1822_s5 = sadd.f32 %s3265_s23, %s1808_s15 }
 0x2ce   :  { %s2693_s1 = spop %2692  ;;  %s2086_s21 = sadd.f32 %s3269_s30, %s2072_s7 }
 0x2cf   :  { %s2695_s9 = spop %2694  ;;  %s2149_s18 = sadd.f32 %s2693_s1, %s2135_s14 }
 0x2d0   :  { %s1836_s17 = sadd.f32 %s3267_s24, %s1822_s5 }
 0x2d1   :  { %s2163_s2 = sadd.f32 %s2695_s9, %s2149_s18 }
 0x2d2   :  { %s2697_s10 = spop %2696 }
 0x2d3   :  { %s3274_s13 = spop %2698  ;;  %s2177_s6 = sadd.f32 %s2697_s10, %s2163_s2 }
 0x2d5   :  { %s2191_s12 = sadd.f32 %s3274_s13, %s2177_s6 }
 0x2d6   :  { %s2701_s16 = spop %2700 }
 0x2d7   :  { %s2703_s0 = spop %2702 }
 0x2da   :  { %s2705_s3 = spop %2704 }
 0x2db   :  { %s2405_s25 = sadd.f32 %s2705_s3, %s2703_s0  ;;  %s2707_s26 = spop %2706 }
 0x2dc   :  { %s2100_s0 = sadd.f32 %s3302_s19, %s2086_s21 }
 0x2dd   :  { %s2419_s20 = sadd.f32 %s2707_s26, %s2405_s25 }
 0x2de   :  { %s2709_s27 = spop %2708  ;;  %s2205_s25 = sadd.f32 %s2701_s16, %s2191_s12 }
 0x2df   :  { %s2433_s8 = sadd.f32 %s2709_s27, %s2419_s20  ;;  %s2711_s11 = spop %2710 }
 0x2e0   :  { %s2206_s23 = sadd.f32 %s2100_s0, %s1836_s17  ;;  %s2208_s7 = smul.f32 0.03125, %s2205_s25 }
 0x2e1   :  { %s2447_s14 = sadd.f32 %s2711_s11, %s2433_s8  ;;  %s2918_s16 = smov [#allocation16]  }
 0x2e2   :  { %s2713_s1 = spop %2712  ;;  %s2207_s13 = smul.f32 0.015625, %s2206_s23 }
 0x2e3   :  { %s2715_s22 = spop %2714  ;;  %s2461_s9 = sadd.f32 %s2713_s1, %s2447_s14 }
 0x2e4   :  { %s2209_s6 = ssub.f32 %s2207_s13, %s2208_s7  ;;  %s2596_s1 = sshll.u32 %s2918_s16, 4  ;;  %s2597_s1 = int_to_ptr.vmem [resolvable:$true] %s2596_s1 }
 0x2e5   :  { %s2475_s29 = sadd.f32 %s2715_s22, %s2461_s9  ;;  %s2919_s14 = smov 0.0  }
 0x2e6   :  { %s2717_s28 = spop %2716  ;;  %s2210_s22 = smax.f32 %s2919_s14, %s2209_s6 }
 0x2e7   :  { %s2719_s3 = spop %2718  ;;  %s2581_s30 = sadd.f32 %s2475_s29, %s1836_s17 }
 0x2e8   :  { %s2510_s18 = sadd.f32 %s2719_s3, %s2717_s28  ;;  %s2883_s17 = scalar_lea.vmem %s2597_s1, 16 }
 0x2e9   :  { %s2582_s19 = smul.f32 0.015625, %s2581_s30  ;;  %p2884_p10 = scmp.ne.s32.totalorder %s2597_s1, %s2883_s17 }
 0x2ea   :  { %s2721_s26 = spop %2720  ;;  %s2887_s0 = scalar_lea.vmem %s2597_s1, 32 }
 0x2eb   :  { %s2524_s4 = sadd.f32 %s2721_s26, %s2510_s18  ;;  %s2723_s20 = spop %2722 }
 0x2ec   :  { %p2888_p11 = scmp.lt.s32.totalorder %s2597_s1, %s2597_s1  ;;  %p2889_p12 = scmp.lt.s32.totalorder %s2887_s0, %s2883_s17 }
 0x2ed   :  { %s2538_s27 = sadd.f32 %s2723_s20, %s2524_s4 }
 0x2ee   :  { %s2725_s10 = spop %2724  ;;  %p2890_p13 = por %p2889_p12, %p2888_p11 }
 0x2ef   :  { %s2552_s15 = sadd.f32 %s2725_s10, %s2538_s27  ;;  %s2727_s2 = spop %2726 }
 0x2f0   :  { %p2891_p0 = pnand %p2890_p13, %p2884_p10 }
 0x2f1   :  { %s2566_s24 = sadd.f32 %s2727_s2, %s2552_s15 }
 0x2f2   :  { %s2729_s8 = spop %2728 }
 0x2f3   :  { %s2580_s5 = sadd.f32 %s2729_s8, %s2566_s24 }
 0x2f5   :  { %s2583_s11 = smul.f32 0.03125, %s2580_s5 }
 0x2f7   :  { %s2584_s21 = ssub.f32 %s2582_s19, %s2583_s11 }
 0x2f9   :  { %s2585_s12 = smax.f32 %s2919_s14, %s2584_s21 }
 0x2fa   :  { %s2586_s28 = sadd.f32 %s2585_s12, %s2210_s22 }
 0x2fc   :  { %v2587_v32 = vstv %s2586_s28 }
 0x2fd   :  { %2589 = vst.msk [vmem:[#allocation16] sm:$0x1] %vm54_vm3, %v2587_v32 }
 0x2fe   :  { %2894 = shalt.err (!%p2891_p0)
}
 0x2ff   :  { %s3303_s18 = sld [smem:[#allocation21_spill]] }
 0x305   :  { %s2895_s25 = scalar_lea.hbm %s3303_s18, 16 }
 0x306   :  { %p2896_p1 = scmp.ne.s32.totalorder %s3303_s18, %s2895_s25  ;;  %p2899_p2 = scmp.lt.u32.totalorder %s2895_s25, %s3303_s18 }
 0x308   :  { %p2901_p3 = pnand %p2899_p2, %p2896_p1 }
 0x30a   :  { %2904 = shalt.err (!%p2901_p3)
}
 0x30b   :  { %2599 = dma.vmem_to_hbm [thread:$0]  %s2597_s1, 16, %s3303_s18, [#allocation12]  }
 0x30c   :  { %2909 = dma.done.wait [#allocation12], 16  }
 0x30d   :  { %2910 = vsyncadd [#allocation12], 4294967280 }
 0x30e   :  { %2603 = vsyncpa [#allocation11], 1 }
 0x30f   :  { %2604 = vsyncpa [#allocation14], 1 }
 0x310   :  { %2605 = vsyncpa [#allocation12], 1 }

</bundles_post_ra>
